<compile_context>
chip_gen: v6e
topology: v6e:2x2x1
jax: 0.10.0
libtpu: 0.0.40
codegen_flags: <defaults>
</compile_context>

<pallas_src>
import functools

import jax
import jax.numpy as jnp
import numpy as np
from jax.experimental import pallas as pl
from jax.experimental.pallas import tpu as pltpu

LN_EPS = 1e-5
_MM_PREC = jax.lax.Precision.HIGHEST   # fp32 matmul accuracy (PyTorch parity)


# ---------------------------------------------------------------------------
# exact GELU (erf via Abramowitz & Stegun 7.1.26, |err| < 1.5e-7) — only uses
# mul/add/div/exp/where, so it lowers cleanly inside Mosaic (VPU + EUP).
# ---------------------------------------------------------------------------
def _erf(x):
    a = jnp.abs(x)
    t = 1.0 / (1.0 + 0.3275911 * a)
    poly = t * (0.254829592 + t * (-0.284496736 + t * (1.421413741
               + t * (-1.453152027 + t * 1.061405429))))
    y = 1.0 - poly * jnp.exp(-a * a)
    return jnp.where(x < 0, -y, y)


def _gelu_exact(x):
    return 0.5 * x * (1.0 + _erf(x * 0.7071067811865476))


# ---------------------------------------------------------------------------
# Fused kernel: one batch element per grid step.
#   fc1 (two half matmuls) + GELU + LayerNorm(gate half)
#   -> stage into row-padded VMEM scratch
#   -> depthwise 3x3 conv (9 shifted taps) + gate multiply + fc2
# ---------------------------------------------------------------------------
def mlp_fused_kernel(x_ref, w1a_ref, b1a_ref, w1b_ref, b1b_ref,
                     g_ref, bt_ref, ml_ref, mr_ref, wdw_ref, bdw_ref,
                     w2_ref, b2_ref, o_ref, xpad_ref, *, hh, ww):
    n = hh * ww
    pad = ww + 1                                      # rows of zero padding
    x = x_ref[0].astype(jnp.float32)                  # (N, C)

    # ---- fc1 first half -> GELU -> x1 (kept for the gate) ------------------
    h1 = jnp.dot(x, w1a_ref[...].astype(jnp.float32),
                 precision=_MM_PREC, preferred_element_type=jnp.float32)
    x1 = _gelu_exact(h1 + b1a_ref[...].astype(jnp.float32))      # (N, D)

    # ---- fc1 second half -> GELU -> LayerNorm (Gate.norm) ------------------
    h2 = jnp.dot(x, w1b_ref[...].astype(jnp.float32),
                 precision=_MM_PREC, preferred_element_type=jnp.float32)
    h2 = _gelu_exact(h2 + b1b_ref[...].astype(jnp.float32))
    mu = jnp.mean(h2, axis=-1, keepdims=True)
    xc = h2 - mu
    var = jnp.mean(xc * xc, axis=-1, keepdims=True)
    x2n = xc * jax.lax.rsqrt(var + LN_EPS)
    x2n = x2n * g_ref[...].astype(jnp.float32) + bt_ref[...].astype(jnp.float32)

    d = x2n.shape[-1]

    # ---- stage gate half into the row-padded VMEM scratch -------------------
    # Zero pads supply the top/bottom image border; left/right borders are
    # handled by the edge masks below (they kill row wrap-around).
    xpad_ref[pl.ds(0, pad), :] = jnp.zeros((pad, d), jnp.float32)
    xpad_ref[pl.ds(pad + n, pad), :] = jnp.zeros((pad, d), jnp.float32)
    xpad_ref[pl.ds(pad, n), :] = x2n

    wdw = wdw_ref[...].astype(jnp.float32)            # (9, D), tap t = ky*3+kx
    mask_l = ml_ref[...]                               # (N, 1) f32
    mask_r = mr_ref[...]                               # (N, 1) f32

    # ---- depthwise 3x3 conv as 9 shifted taps --------------------------------
    acc = jnp.zeros((n, d), jnp.float32)
    tap = 0
    for dy in (-1, 0, 1):
        for dx in (-1, 0, 1):
            if dy == 0 and dx == 0:
                v = x2n                                # center tap: still live
            else:
                start = pad + dy * ww + dx
                v = xpad_ref[pl.ds(start, n), :]
                if dx == -1:                           # kill left-edge wrap
                    v = v * mask_l
                elif dx == 1:                          # kill right-edge wrap
                    v = v * mask_r
            acc = acc + v * wdw[tap:tap + 1, :]
            tap += 1

    conv = acc + bdw_ref[...].astype(jnp.float32)

    # ---- gate multiply + fc2 -------------------------------------------------
    gate = x1 * conv
    y = jnp.dot(gate, w2_ref[...].astype(jnp.float32),
                precision=_MM_PREC, preferred_element_type=jnp.float32)
    o_ref[0] = (y + b2_ref[...].astype(jnp.float32)).astype(o_ref.dtype)


# ---------------------------------------------------------------------------
# Wrapper
# ---------------------------------------------------------------------------
def mlp_forward(x, params, *, H, W):
    """x: (B, N=H*W, C) -> (B, N, out_features)."""
    B, N, C = x.shape
    D = params["w1a"].shape[-1]            # hidden_features // 2
    Cout = params["w2"].shape[-1]
    assert N == H * W

    # tiny per-position column masks for the left/right image edges
    col = jnp.arange(N, dtype=jnp.int32) % W
    mask_l = (col > 0).astype(jnp.float32)[:, None]      # used on dx = -1 taps
    mask_r = (col < W - 1).astype(jnp.float32)[:, None]  # used on dx = +1 taps

    npad = N + 2 * (W + 1)

    out = pl.pallas_call(
        functools.partial(mlp_fused_kernel, hh=H, ww=W),
        out_shape=jax.ShapeDtypeStruct((B, N, Cout), x.dtype),
        grid_spec=pltpu.PrefetchScalarGridSpec(
            num_scalar_prefetch=0,
            grid=(B,),
            in_specs=[
                pl.BlockSpec((1, N, C), lambda b: (b, 0, 0)),   # x (streamed)
                pl.BlockSpec((C, D), lambda b: (0, 0)),         # w1a
                pl.BlockSpec((1, D), lambda b: (0, 0)),         # b1a
                pl.BlockSpec((C, D), lambda b: (0, 0)),         # w1b
                pl.BlockSpec((1, D), lambda b: (0, 0)),         # b1b
                pl.BlockSpec((1, D), lambda b: (0, 0)),         # ln gamma
                pl.BlockSpec((1, D), lambda b: (0, 0)),         # ln beta
                pl.BlockSpec((N, 1), lambda b: (0, 0)),         # mask_l
                pl.BlockSpec((N, 1), lambda b: (0, 0)),         # mask_r
                pl.BlockSpec((9, D), lambda b: (0, 0)),         # dw conv weight
                pl.BlockSpec((1, D), lambda b: (0, 0)),         # dw conv bias
                pl.BlockSpec((D, Cout), lambda b: (0, 0)),      # w2
                pl.BlockSpec((1, Cout), lambda b: (0, 0)),      # b2
            ],
            out_specs=pl.BlockSpec((1, N, Cout), lambda b: (b, 0, 0)),
            scratch_shapes=[pltpu.VMEM((npad, D), jnp.float32)],
        ),
        compiler_params=pltpu.CompilerParams(
            dimension_semantics=("parallel",)),
    )(x, params["w1a"], params["b1a"], params["w1b"], params["b1b"],
      params["ln_g"], params["ln_b"], mask_l, mask_r,
      params["wdw"], params["bdw"], params["w2"], params["b2"])
    # TODO(synk): for very large H*W a single batch element may exceed VMEM;
    # then tile over row groups with a 1-row halo via manual DMA (pl.ANY +
    # pltpu.make_async_copy) instead of the whole-image block used here.
    return out


def convert_torch_params(w1_pt, b1_pt, ln_g, ln_b, wdw_pt, bdw_pt, w2_pt, b2_pt):
    """PyTorch-layout params -> kernel layouts.
    w1_pt (hidden, C) fc1.weight; ln_g/ln_b (D,) Gate.norm; wdw_pt (D,1,3,3)
    Gate.conv.weight (depthwise); w2_pt (out, D) fc2.weight."""
    hidden = w1_pt.shape[0]
    D = hidden // 2
    w1 = jnp.transpose(w1_pt)                         # (C, hidden)
    return dict(
        w1a=w1[:, :D], b1a=b1_pt[None, :D],
        w1b=w1[:, D:], b1b=b1_pt[None, D:],
        ln_g=ln_g[None, :], ln_b=ln_b[None, :],
        wdw=jnp.transpose(wdw_pt.reshape(D, 9)),      # (9, D), tap t = ky*3+kx
        bdw=bdw_pt[None, :],
        w2=jnp.transpose(w2_pt), b2=b2_pt[None, :],
    )


# ---------------------------------------------------------------------------
# Pure-JAX reference (same math, plain XLA ops) for the correctness check.
# ---------------------------------------------------------------------------
def mlp_reference(x, w1_pt, b1_pt, ln_g, ln_b, wdw_pt, bdw_pt, w2_pt, b2_pt,
                  H, W):
    B, N, _ = x.shape
    D = w1_pt.shape[0] // 2
    h = jnp.dot(x, w1_pt.T, precision=_MM_PREC) + b1_pt
    h = jax.nn.gelu(h, approximate=False)
    x1, x2 = h[..., :D], h[..., D:]
    mu = jnp.mean(x2, axis=-1, keepdims=True)
    var = jnp.mean((x2 - mu) ** 2, axis=-1, keepdims=True)
    x2n = (x2 - mu) / jnp.sqrt(var + LN_EPS) * ln_g + ln_b
    img = x2n.reshape(B, H, W, D)
    kern = jnp.transpose(wdw_pt, (2, 3, 1, 0))        # (3, 3, 1, D) HWIO
    conv = jax.lax.conv_general_dilated(
        img, kern, window_strides=(1, 1), padding="SAME",
        dimension_numbers=("NHWC", "HWIO", "NHWC"),
        feature_group_count=D, precision=_MM_PREC) + bdw_pt
    gate = x1 * conv.reshape(B, N, D)
    return jnp.dot(gate, w2_pt.T, precision=_MM_PREC) + b2_pt


if __name__ == "__main__":
    B, H, W = 2, 8, 8
    N = H * W
    C = 32            # in_features (= out_features by default)
    hidden = 64       # hidden_features
    D = hidden // 2

    key = jax.random.PRNGKey(0)
    ks = jax.random.split(key, 9)
    w1_pt = 0.08 * jax.random.normal(ks[0], (hidden, C), jnp.float32)
    b1_pt = 0.05 * jax.random.normal(ks[1], (hidden,), jnp.float32)
    ln_g = 1.0 + 0.1 * jax.random.normal(ks[2], (D,), jnp.float32)
    ln_b = 0.1 * jax.random.normal(ks[3], (D,), jnp.float32)
    wdw_pt = 0.2 * jax.random.normal(ks[4], (D, 1, 3, 3), jnp.float32)
    bdw_pt = 0.1 * jax.random.normal(ks[5], (D,), jnp.float32)
    w2_pt = 0.08 * jax.random.normal(ks[6], (C, D), jnp.float32)
    b2_pt = 0.05 * jax.random.normal(ks[7], (C,), jnp.float32)
    x = jax.random.normal(ks[8], (B, N, C), jnp.float32)

    params = convert_torch_params(w1_pt, b1_pt, ln_g, ln_b,
                                  wdw_pt, bdw_pt, w2_pt, b2_pt)

    fwd = jax.jit(lambda xx: mlp_forward(xx, params, H=H, W=W))
    out = jax.block_until_ready(fwd(x))
    assert out.shape == (B, N, C), out.shape
    assert out.dtype == jnp.float32

    ref = jax.block_until_ready(
        mlp_reference(x, w1_pt, b1_pt, ln_g, ln_b, wdw_pt, bdw_pt,
                      w2_pt, b2_pt, H, W))
    np.testing.assert_allclose(np.asarray(out), np.asarray(ref),
                               rtol=2e-3, atol=2e-3)
    print("KERNEL_OK")
</pallas_src>

<mosaic_0001>
module attributes {stable_mosaic.version = 11 : i64} {
  func.func @mlp_fused_kernel(%arg0: i32, %arg1: memref<1x64x32xf32, #tpu.memory_space<vmem>>, %arg2: memref<32x32xf32, #tpu.memory_space<vmem>>, %arg3: memref<1x32xf32, #tpu.memory_space<vmem>>, %arg4: memref<32x32xf32, #tpu.memory_space<vmem>>, %arg5: memref<1x32xf32, #tpu.memory_space<vmem>>, %arg6: memref<1x32xf32, #tpu.memory_space<vmem>>, %arg7: memref<1x32xf32, #tpu.memory_space<vmem>>, %arg8: memref<64x1xf32, #tpu.memory_space<vmem>>, %arg9: memref<64x1xf32, #tpu.memory_space<vmem>>, %arg10: memref<9x32xf32, #tpu.memory_space<vmem>>, %arg11: memref<1x32xf32, #tpu.memory_space<vmem>>, %arg12: memref<32x32xf32, #tpu.memory_space<vmem>>, %arg13: memref<1x32xf32, #tpu.memory_space<vmem>>, %arg14: memref<1x64x32xf32, #tpu.memory_space<vmem>>, %arg15: memref<82x32xf32, #tpu.memory_space<vmem>>) attributes {dimension_semantics = [#tpu.dimension_semantics<parallel>], iteration_bounds = array<i64: 2>, scalar_prefetch = 0 : i64, scratch_operands = 1 : i64, tpu.core_type = #tpu.core_type<tc>, window_params = [{transform_indices = @transform_0, window_bounds = array<i64: 1, 64, 32>}, {pipeline_mode = #tpu.pipeline_mode<synchronous>, transform_indices = @transform_1, window_bounds = array<i64: 32, 32>}, {pipeline_mode = #tpu.pipeline_mode<synchronous>, transform_indices = @transform_2, window_bounds = array<i64: 1, 32>}, {pipeline_mode = #tpu.pipeline_mode<synchronous>, transform_indices = @transform_3, window_bounds = array<i64: 32, 32>}, {pipeline_mode = #tpu.pipeline_mode<synchronous>, transform_indices = @transform_4, window_bounds = array<i64: 1, 32>}, {pipeline_mode = #tpu.pipeline_mode<synchronous>, transform_indices = @transform_5, window_bounds = array<i64: 1, 32>}, {pipeline_mode = #tpu.pipeline_mode<synchronous>, transform_indices = @transform_6, window_bounds = array<i64: 1, 32>}, {pipeline_mode = #tpu.pipeline_mode<synchronous>, transform_indices = @transform_7, window_bounds = array<i64: 64, 1>}, {pipeline_mode = #tpu.pipeline_mode<synchronous>, transform_indices = @transform_8, window_bounds = array<i64: 64, 1>}, {pipeline_mode = #tpu.pipeline_mode<synchronous>, transform_indices = @transform_9, window_bounds = array<i64: 9, 32>}, {pipeline_mode = #tpu.pipeline_mode<synchronous>, transform_indices = @transform_10, window_bounds = array<i64: 1, 32>}, {pipeline_mode = #tpu.pipeline_mode<synchronous>, transform_indices = @transform_11, window_bounds = array<i64: 32, 32>}, {pipeline_mode = #tpu.pipeline_mode<synchronous>, transform_indices = @transform_12, window_bounds = array<i64: 1, 32>}, {transform_indices = @transform_13, window_bounds = array<i64: 1, 64, 32>}]} {
    %c0 = arith.constant 0 : index
    %c0_0 = arith.constant 0 : index
    %c0_1 = arith.constant 0 : index
    %0 = vector.load %arg1[%c0, %c0_0, %c0_1] : memref<1x64x32xf32, #tpu.memory_space<vmem>>, vector<1x64x32xf32>
    %1 = vector.shape_cast %0 : vector<1x64x32xf32> to vector<64x32xf32>
    %c0_2 = arith.constant 0 : index
    %c0_3 = arith.constant 0 : index
    %2 = vector.load %arg2[%c0_2, %c0_3] : memref<32x32xf32, #tpu.memory_space<vmem>>, vector<32x32xf32>
    %cst = arith.constant dense<0.000000e+00> : vector<64x32xf32>
    %3 = tpu.matmul %1, %2, %cst {dimension_numbers = #tpu.dot_dimension_numbers<[1], [0], [0], [1], [0, 0, 1, 1], [], []>, precision = #tpu.contract_precision<fp32>} : vector<64x32xf32>, vector<32x32xf32>, vector<64x32xf32> -> vector<64x32xf32>
    %c0_4 = arith.constant 0 : index
    %c0_5 = arith.constant 0 : index
    %4 = vector.load %arg3[%c0_4, %c0_5] : memref<1x32xf32, #tpu.memory_space<vmem>>, vector<1x32xf32>
    %5 = vector.broadcast %4 : vector<1x32xf32> to vector<64x32xf32>
    %6 = arith.addf %3, %5 : vector<64x32xf32>
    %cst_6 = arith.constant 5.000000e-01 : f32
    %7 = vector.broadcast %cst_6 : f32 to vector<64x32xf32>
    %8 = arith.mulf %7, %6 : vector<64x32xf32>
    %cst_7 = arith.constant 0.707106769 : f32
    %9 = vector.broadcast %cst_7 : f32 to vector<64x32xf32>
    %10 = arith.mulf %6, %9 : vector<64x32xf32>
    %11 = math.absf %10 : vector<64x32xf32>
    %cst_8 = arith.constant 0.327591091 : f32
    %12 = vector.broadcast %cst_8 : f32 to vector<64x32xf32>
    %13 = arith.mulf %12, %11 : vector<64x32xf32>
    %cst_9 = arith.constant 1.000000e+00 : f32
    %14 = vector.broadcast %cst_9 : f32 to vector<64x32xf32>
    %15 = arith.addf %14, %13 : vector<64x32xf32>
    %cst_10 = arith.constant 1.000000e+00 : f32
    %16 = vector.broadcast %cst_10 : f32 to vector<64x32xf32>
    %17 = arith.divf %16, %15 : vector<64x32xf32>
    %cst_11 = arith.constant 1.06140542 : f32
    %18 = vector.broadcast %cst_11 : f32 to vector<64x32xf32>
    %19 = arith.mulf %17, %18 : vector<64x32xf32>
    %cst_12 = arith.constant -1.45315206 : f32
    %20 = vector.broadcast %cst_12 : f32 to vector<64x32xf32>
    %21 = arith.addf %20, %19 : vector<64x32xf32>
    %22 = arith.mulf %17, %21 : vector<64x32xf32>
    %cst_13 = arith.constant 1.42141378 : f32
    %23 = vector.broadcast %cst_13 : f32 to vector<64x32xf32>
    %24 = arith.addf %23, %22 : vector<64x32xf32>
    %25 = arith.mulf %17, %24 : vector<64x32xf32>
    %cst_14 = arith.constant -0.284496725 : f32
    %26 = vector.broadcast %cst_14 : f32 to vector<64x32xf32>
    %27 = arith.addf %26, %25 : vector<64x32xf32>
    %28 = arith.mulf %17, %27 : vector<64x32xf32>
    %cst_15 = arith.constant 0.254829586 : f32
    %29 = vector.broadcast %cst_15 : f32 to vector<64x32xf32>
    %30 = arith.addf %29, %28 : vector<64x32xf32>
    %31 = arith.mulf %17, %30 : vector<64x32xf32>
    %cst_16 = arith.constant 0.000000e+00 : f32
    %32 = vector.broadcast %cst_16 : f32 to vector<64x32xf32>
    %33 = arith.subf %32, %11 : vector<64x32xf32>
    %34 = arith.mulf %33, %11 : vector<64x32xf32>
    %35 = math.exp %34 : vector<64x32xf32>
    %36 = arith.mulf %31, %35 : vector<64x32xf32>
    %cst_17 = arith.constant 1.000000e+00 : f32
    %37 = vector.broadcast %cst_17 : f32 to vector<64x32xf32>
    %38 = arith.subf %37, %36 : vector<64x32xf32>
    %cst_18 = arith.constant 0.000000e+00 : f32
    %39 = vector.broadcast %cst_18 : f32 to vector<64x32xf32>
    %40 = arith.cmpf olt, %10, %39 : vector<64x32xf32>
    %cst_19 = arith.constant 0.000000e+00 : f32
    %41 = vector.broadcast %cst_19 : f32 to vector<64x32xf32>
    %42 = arith.subf %41, %38 : vector<64x32xf32>
    %43 = arith.select %40, %42, %38 : vector<64x32xi1>, vector<64x32xf32>
    %cst_20 = arith.constant 1.000000e+00 : f32
    %44 = vector.broadcast %cst_20 : f32 to vector<64x32xf32>
    %45 = arith.addf %44, %43 : vector<64x32xf32>
    %46 = arith.mulf %8, %45 : vector<64x32xf32>
    %c0_21 = arith.constant 0 : index
    %c0_22 = arith.constant 0 : index
    %47 = vector.load %arg4[%c0_21, %c0_22] : memref<32x32xf32, #tpu.memory_space<vmem>>, vector<32x32xf32>
    %cst_23 = arith.constant dense<0.000000e+00> : vector<64x32xf32>
    %48 = tpu.matmul %1, %47, %cst_23 {dimension_numbers = #tpu.dot_dimension_numbers<[1], [0], [0], [1], [0, 0, 1, 1], [], []>, precision = #tpu.contract_precision<fp32>} : vector<64x32xf32>, vector<32x32xf32>, vector<64x32xf32> -> vector<64x32xf32>
    %c0_24 = arith.constant 0 : index
    %c0_25 = arith.constant 0 : index
    %49 = vector.load %arg5[%c0_24, %c0_25] : memref<1x32xf32, #tpu.memory_space<vmem>>, vector<1x32xf32>
    %50 = vector.broadcast %49 : vector<1x32xf32> to vector<64x32xf32>
    %51 = arith.addf %48, %50 : vector<64x32xf32>
    %cst_26 = arith.constant 5.000000e-01 : f32
    %52 = vector.broadcast %cst_26 : f32 to vector<64x32xf32>
    %53 = arith.mulf %52, %51 : vector<64x32xf32>
    %cst_27 = arith.constant 0.707106769 : f32
    %54 = vector.broadcast %cst_27 : f32 to vector<64x32xf32>
    %55 = arith.mulf %51, %54 : vector<64x32xf32>
    %56 = math.absf %55 : vector<64x32xf32>
    %cst_28 = arith.constant 0.327591091 : f32
    %57 = vector.broadcast %cst_28 : f32 to vector<64x32xf32>
    %58 = arith.mulf %57, %56 : vector<64x32xf32>
    %cst_29 = arith.constant 1.000000e+00 : f32
    %59 = vector.broadcast %cst_29 : f32 to vector<64x32xf32>
    %60 = arith.addf %59, %58 : vector<64x32xf32>
    %cst_30 = arith.constant 1.000000e+00 : f32
    %61 = vector.broadcast %cst_30 : f32 to vector<64x32xf32>
    %62 = arith.divf %61, %60 : vector<64x32xf32>
    %cst_31 = arith.constant 1.06140542 : f32
    %63 = vector.broadcast %cst_31 : f32 to vector<64x32xf32>
    %64 = arith.mulf %62, %63 : vector<64x32xf32>
    %cst_32 = arith.constant -1.45315206 : f32
    %65 = vector.broadcast %cst_32 : f32 to vector<64x32xf32>
    %66 = arith.addf %65, %64 : vector<64x32xf32>
    %67 = arith.mulf %62, %66 : vector<64x32xf32>
    %cst_33 = arith.constant 1.42141378 : f32
    %68 = vector.broadcast %cst_33 : f32 to vector<64x32xf32>
    %69 = arith.addf %68, %67 : vector<64x32xf32>
    %70 = arith.mulf %62, %69 : vector<64x32xf32>
    %cst_34 = arith.constant -0.284496725 : f32
    %71 = vector.broadcast %cst_34 : f32 to vector<64x32xf32>
    %72 = arith.addf %71, %70 : vector<64x32xf32>
    %73 = arith.mulf %62, %72 : vector<64x32xf32>
    %cst_35 = arith.constant 0.254829586 : f32
    %74 = vector.broadcast %cst_35 : f32 to vector<64x32xf32>
    %75 = arith.addf %74, %73 : vector<64x32xf32>
    %76 = arith.mulf %62, %75 : vector<64x32xf32>
    %cst_36 = arith.constant 0.000000e+00 : f32
    %77 = vector.broadcast %cst_36 : f32 to vector<64x32xf32>
    %78 = arith.subf %77, %56 : vector<64x32xf32>
    %79 = arith.mulf %78, %56 : vector<64x32xf32>
    %80 = math.exp %79 : vector<64x32xf32>
    %81 = arith.mulf %76, %80 : vector<64x32xf32>
    %cst_37 = arith.constant 1.000000e+00 : f32
    %82 = vector.broadcast %cst_37 : f32 to vector<64x32xf32>
    %83 = arith.subf %82, %81 : vector<64x32xf32>
    %cst_38 = arith.constant 0.000000e+00 : f32
    %84 = vector.broadcast %cst_38 : f32 to vector<64x32xf32>
    %85 = arith.cmpf olt, %55, %84 : vector<64x32xf32>
    %cst_39 = arith.constant 0.000000e+00 : f32
    %86 = vector.broadcast %cst_39 : f32 to vector<64x32xf32>
    %87 = arith.subf %86, %83 : vector<64x32xf32>
    %88 = arith.select %85, %87, %83 : vector<64x32xi1>, vector<64x32xf32>
    %cst_40 = arith.constant 1.000000e+00 : f32
    %89 = vector.broadcast %cst_40 : f32 to vector<64x32xf32>
    %90 = arith.addf %89, %88 : vector<64x32xf32>
    %91 = arith.mulf %53, %90 : vector<64x32xf32>
    %cst_41 = arith.constant dense<0.000000e+00> : vector<64xf32>
    %92 = vector.multi_reduction <add>, %91, %cst_41 [1] : vector<64x32xf32> to vector<64xf32>
    %93 = vector.shape_cast %92 : vector<64xf32> to vector<64x1xf32>
    %cst_42 = arith.constant 3.200000e+01 : f32
    %94 = vector.broadcast %cst_42 : f32 to vector<64x1xf32>
    %95 = arith.divf %93, %94 : vector<64x1xf32>
    %96 = vector.broadcast %95 : vector<64x1xf32> to vector<64x32xf32>
    %97 = arith.subf %91, %96 : vector<64x32xf32>
    %98 = arith.mulf %97, %97 : vector<64x32xf32>
    %cst_43 = arith.constant dense<0.000000e+00> : vector<64xf32>
    %99 = vector.multi_reduction <add>, %98, %cst_43 [1] : vector<64x32xf32> to vector<64xf32>
    %100 = vector.shape_cast %99 : vector<64xf32> to vector<64x1xf32>
    %cst_44 = arith.constant 3.200000e+01 : f32
    %101 = vector.broadcast %cst_44 : f32 to vector<64x1xf32>
    %102 = arith.divf %100, %101 : vector<64x1xf32>
    %cst_45 = arith.constant 9.99999974E-6 : f32
    %103 = vector.broadcast %cst_45 : f32 to vector<64x1xf32>
    %104 = arith.addf %102, %103 : vector<64x1xf32>
    %105 = math.rsqrt %104 : vector<64x1xf32>
    %106 = vector.broadcast %105 : vector<64x1xf32> to vector<64x32xf32>
    %107 = arith.mulf %97, %106 : vector<64x32xf32>
    %c0_46 = arith.constant 0 : index
    %c0_47 = arith.constant 0 : index
    %108 = vector.load %arg6[%c0_46, %c0_47] : memref<1x32xf32, #tpu.memory_space<vmem>>, vector<1x32xf32>
    %109 = vector.broadcast %108 : vector<1x32xf32> to vector<64x32xf32>
    %110 = arith.mulf %107, %109 : vector<64x32xf32>
    %c0_48 = arith.constant 0 : index
    %c0_49 = arith.constant 0 : index
    %111 = vector.load %arg7[%c0_48, %c0_49] : memref<1x32xf32, #tpu.memory_space<vmem>>, vector<1x32xf32>
    %112 = vector.broadcast %111 : vector<1x32xf32> to vector<64x32xf32>
    %113 = arith.addf %110, %112 : vector<64x32xf32>
    %cst_50 = arith.constant 0.000000e+00 : f32
    %114 = vector.broadcast %cst_50 : f32 to vector<9x32xf32>
    %c0_51 = arith.constant 0 : index
    %c0_52 = arith.constant 0 : index
    %115 = vector.load %arg15[%c0_51, %c0_52] : memref<82x32xf32, #tpu.memory_space<vmem>>, vector<9x32xf32>
    tpu.vector_store %arg15[%c0_51, %c0_52], %114 {strides = array<i32>} : memref<82x32xf32, #tpu.memory_space<vmem>>, vector<9x32xf32>,
    %cst_53 = arith.constant 0.000000e+00 : f32
    %116 = vector.broadcast %cst_53 : f32 to vector<9x32xf32>
    %c73 = arith.constant 73 : index
    %c0_54 = arith.constant 0 : index
    %117 = vector.load %arg15[%c73, %c0_54] : memref<82x32xf32, #tpu.memory_space<vmem>>, vector<9x32xf32>
    tpu.vector_store %arg15[%c73, %c0_54], %116 {strides = array<i32>} : memref<82x32xf32, #tpu.memory_space<vmem>>, vector<9x32xf32>,
    %c9 = arith.constant 9 : index
    %c0_55 = arith.constant 0 : index
    %118 = vector.load %arg15[%c9, %c0_55] : memref<82x32xf32, #tpu.memory_space<vmem>>, vector<64x32xf32>
    tpu.vector_store %arg15[%c9, %c0_55], %113 {strides = array<i32>} : memref<82x32xf32, #tpu.memory_space<vmem>>, vector<64x32xf32>,
    %c0_56 = arith.constant 0 : index
    %c0_57 = arith.constant 0 : index
    %119 = vector.load %arg10[%c0_56, %c0_57] : memref<9x32xf32, #tpu.memory_space<vmem>>, vector<9x32xf32>
    %c0_58 = arith.constant 0 : index
    %c0_59 = arith.constant 0 : index
    %120 = vector.load %arg8[%c0_58, %c0_59] : memref<64x1xf32, #tpu.memory_space<vmem>>, vector<64x1xf32>
    %c0_60 = arith.constant 0 : index
    %c0_61 = arith.constant 0 : index
    %121 = vector.load %arg9[%c0_60, %c0_61] : memref<64x1xf32, #tpu.memory_space<vmem>>, vector<64x1xf32>
    %cst_62 = arith.constant 0.000000e+00 : f32
    %122 = vector.broadcast %cst_62 : f32 to vector<64x32xf32>
    %c0_63 = arith.constant 0 : index
    %c0_64 = arith.constant 0 : index
    %123 = vector.load %arg15[%c0_63, %c0_64] : memref<82x32xf32, #tpu.memory_space<vmem>>, vector<64x32xf32>
    %124 = vector.broadcast %120 : vector<64x1xf32> to vector<64x32xf32>
    %125 = arith.mulf %123, %124 : vector<64x32xf32>
    %126 = vector.extract_strided_slice %119 {offsets = [0, 0], sizes = [1, 32], strides = [1, 1]} : vector<9x32xf32> to vector<1x32xf32>
    %127 = vector.broadcast %126 : vector<1x32xf32> to vector<64x32xf32>
    %128 = arith.mulf %125, %127 : vector<64x32xf32>
    %129 = arith.addf %122, %128 : vector<64x32xf32>
    %c1 = arith.constant 1 : index
    %c0_65 = arith.constant 0 : index
    %130 = vector.load %arg15[%c1, %c0_65] : memref<82x32xf32, #tpu.memory_space<vmem>>, vector<64x32xf32>
    %131 = vector.extract_strided_slice %119 {offsets = [1, 0], sizes = [1, 32], strides = [1, 1]} : vector<9x32xf32> to vector<1x32xf32>
    %132 = vector.broadcast %131 : vector<1x32xf32> to vector<64x32xf32>
    %133 = arith.mulf %130, %132 : vector<64x32xf32>
    %134 = arith.addf %129, %133 : vector<64x32xf32>
    %c2 = arith.constant 2 : index
    %c0_66 = arith.constant 0 : index
    %135 = vector.load %arg15[%c2, %c0_66] : memref<82x32xf32, #tpu.memory_space<vmem>>, vector<64x32xf32>
    %136 = vector.broadcast %121 : vector<64x1xf32> to vector<64x32xf32>
    %137 = arith.mulf %135, %136 : vector<64x32xf32>
    %138 = vector.extract_strided_slice %119 {offsets = [2, 0], sizes = [1, 32], strides = [1, 1]} : vector<9x32xf32> to vector<1x32xf32>
    %139 = vector.broadcast %138 : vector<1x32xf32> to vector<64x32xf32>
    %140 = arith.mulf %137, %139 : vector<64x32xf32>
    %141 = arith.addf %134, %140 : vector<64x32xf32>
    %c8 = arith.constant 8 : index
    %c0_67 = arith.constant 0 : index
    %142 = vector.load %arg15[%c8, %c0_67] : memref<82x32xf32, #tpu.memory_space<vmem>>, vector<64x32xf32>
    %143 = vector.broadcast %120 : vector<64x1xf32> to vector<64x32xf32>
    %144 = arith.mulf %142, %143 : vector<64x32xf32>
    %145 = vector.extract_strided_slice %119 {offsets = [3, 0], sizes = [1, 32], strides = [1, 1]} : vector<9x32xf32> to vector<1x32xf32>
    %146 = vector.broadcast %145 : vector<1x32xf32> to vector<64x32xf32>
    %147 = arith.mulf %144, %146 : vector<64x32xf32>
    %148 = arith.addf %141, %147 : vector<64x32xf32>
    %149 = vector.extract_strided_slice %119 {offsets = [4, 0], sizes = [1, 32], strides = [1, 1]} : vector<9x32xf32> to vector<1x32xf32>
    %150 = vector.broadcast %149 : vector<1x32xf32> to vector<64x32xf32>
    %151 = arith.mulf %113, %150 : vector<64x32xf32>
    %152 = arith.addf %148, %151 : vector<64x32xf32>
    %c10 = arith.constant 10 : index
    %c0_68 = arith.constant 0 : index
    %153 = vector.load %arg15[%c10, %c0_68] : memref<82x32xf32, #tpu.memory_space<vmem>>, vector<64x32xf32>
    %154 = vector.broadcast %121 : vector<64x1xf32> to vector<64x32xf32>
    %155 = arith.mulf %153, %154 : vector<64x32xf32>
    %156 = vector.extract_strided_slice %119 {offsets = [5, 0], sizes = [1, 32], strides = [1, 1]} : vector<9x32xf32> to vector<1x32xf32>
    %157 = vector.broadcast %156 : vector<1x32xf32> to vector<64x32xf32>
    %158 = arith.mulf %155, %157 : vector<64x32xf32>
    %159 = arith.addf %152, %158 : vector<64x32xf32>
    %c16 = arith.constant 16 : index
    %c0_69 = arith.constant 0 : index
    %160 = vector.load %arg15[%c16, %c0_69] : memref<82x32xf32, #tpu.memory_space<vmem>>, vector<64x32xf32>
    %161 = vector.broadcast %120 : vector<64x1xf32> to vector<64x32xf32>
    %162 = arith.mulf %160, %161 : vector<64x32xf32>
    %163 = vector.extract_strided_slice %119 {offsets = [6, 0], sizes = [1, 32], strides = [1, 1]} : vector<9x32xf32> to vector<1x32xf32>
    %164 = vector.broadcast %163 : vector<1x32xf32> to vector<64x32xf32>
    %165 = arith.mulf %162, %164 : vector<64x32xf32>
    %166 = arith.addf %159, %165 : vector<64x32xf32>
    %c17 = arith.constant 17 : index
    %c0_70 = arith.constant 0 : index
    %167 = vector.load %arg15[%c17, %c0_70] : memref<82x32xf32, #tpu.memory_space<vmem>>, vector<64x32xf32>
    %168 = vector.extract_strided_slice %119 {offsets = [7, 0], sizes = [1, 32], strides = [1, 1]} : vector<9x32xf32> to vector<1x32xf32>
    %169 = vector.broadcast %168 : vector<1x32xf32> to vector<64x32xf32>
    %170 = arith.mulf %167, %169 : vector<64x32xf32>
    %171 = arith.addf %166, %170 : vector<64x32xf32>
    %c18 = arith.constant 18 : index
    %c0_71 = arith.constant 0 : index
    %172 = vector.load %arg15[%c18, %c0_71] : memref<82x32xf32, #tpu.memory_space<vmem>>, vector<64x32xf32>
    %173 = vector.broadcast %121 : vector<64x1xf32> to vector<64x32xf32>
    %174 = arith.mulf %172, %173 : vector<64x32xf32>
    %175 = vector.extract_strided_slice %119 {offsets = [8, 0], sizes = [1, 32], strides = [1, 1]} : vector<9x32xf32> to vector<1x32xf32>
    %176 = vector.broadcast %175 : vector<1x32xf32> to vector<64x32xf32>
    %177 = arith.mulf %174, %176 : vector<64x32xf32>
    %178 = arith.addf %171, %177 : vector<64x32xf32>
    %c0_72 = arith.constant 0 : index
    %c0_73 = arith.constant 0 : index
    %179 = vector.load %arg11[%c0_72, %c0_73] : memref<1x32xf32, #tpu.memory_space<vmem>>, vector<1x32xf32>
    %180 = vector.broadcast %179 : vector<1x32xf32> to vector<64x32xf32>
    %181 = arith.addf %178, %180 : vector<64x32xf32>
    %182 = arith.mulf %46, %181 : vector<64x32xf32>
    %c0_74 = arith.constant 0 : index
    %c0_75 = arith.constant 0 : index
    %183 = vector.load %arg12[%c0_74, %c0_75] : memref<32x32xf32, #tpu.memory_space<vmem>>, vector<32x32xf32>
    %cst_76 = arith.constant dense<0.000000e+00> : vector<64x32xf32>
    %184 = tpu.matmul %182, %183, %cst_76 {dimension_numbers = #tpu.dot_dimension_numbers<[1], [0], [0], [1], [0, 0, 1, 1], [], []>, precision = #tpu.contract_precision<fp32>} : vector<64x32xf32>, vector<32x32xf32>, vector<64x32xf32> -> vector<64x32xf32>
    %c0_77 = arith.constant 0 : index
    %c0_78 = arith.constant 0 : index
    %185 = vector.load %arg13[%c0_77, %c0_78] : memref<1x32xf32, #tpu.memory_space<vmem>>, vector<1x32xf32>
    %186 = vector.broadcast %185 : vector<1x32xf32> to vector<64x32xf32>
    %187 = arith.addf %184, %186 : vector<64x32xf32>
    %c0_79 = arith.constant 0 : index
    %c0_80 = arith.constant 0 : index
    %c0_81 = arith.constant 0 : index
    %188 = vector.load %arg14[%c0_79, %c0_80, %c0_81] : memref<1x64x32xf32, #tpu.memory_space<vmem>>, vector<1x64x32xf32>
    %189 = vector.shape_cast %188 : vector<1x64x32xf32> to vector<64x32xf32>
    %190 = vector.shape_cast %187 : vector<64x32xf32> to vector<1x64x32xf32>
    tpu.vector_store %arg14[%c0_79, %c0_80, %c0_81], %190 {strides = array<i32>} : memref<1x64x32xf32, #tpu.memory_space<vmem>>, vector<1x64x32xf32>,
    return
  }
  func.func @transform_0(%arg0: i32) -> (i32, i32, i32) {
    %c0_i32 = arith.constant 0 : i32
    %c0_i32_0 = arith.constant 0 : i32
    %c0_i32_1 = arith.constant 0 : i32
    return %arg0, %c0_i32, %c0_i32_0 : i32, i32, i32
  }
  func.func @transform_1(%arg0: i32) -> (i32, i32) {
    %c0_i32 = arith.constant 0 : i32
    %c0_i32_0 = arith.constant 0 : i32
    %c0_i32_1 = arith.constant 0 : i32
    return %c0_i32, %c0_i32_0 : i32, i32
  }
  func.func @transform_2(%arg0: i32) -> (i32, i32) {
    %c0_i32 = arith.constant 0 : i32
    %c0_i32_0 = arith.constant 0 : i32
    %c0_i32_1 = arith.constant 0 : i32
    return %c0_i32, %c0_i32_0 : i32, i32
  }
  func.func @transform_3(%arg0: i32) -> (i32, i32) {
    %c0_i32 = arith.constant 0 : i32
    %c0_i32_0 = arith.constant 0 : i32
    %c0_i32_1 = arith.constant 0 : i32
    return %c0_i32, %c0_i32_0 : i32, i32
  }
  func.func @transform_4(%arg0: i32) -> (i32, i32) {
    %c0_i32 = arith.constant 0 : i32
    %c0_i32_0 = arith.constant 0 : i32
    %c0_i32_1 = arith.constant 0 : i32
    return %c0_i32, %c0_i32_0 : i32, i32
  }
  func.func @transform_5(%arg0: i32) -> (i32, i32) {
    %c0_i32 = arith.constant 0 : i32
    %c0_i32_0 = arith.constant 0 : i32
    %c0_i32_1 = arith.constant 0 : i32
    return %c0_i32, %c0_i32_0 : i32, i32
  }
  func.func @transform_6(%arg0: i32) -> (i32, i32) {
    %c0_i32 = arith.constant 0 : i32
    %c0_i32_0 = arith.constant 0 : i32
    %c0_i32_1 = arith.constant 0 : i32
    return %c0_i32, %c0_i32_0 : i32, i32
  }
  func.func @transform_7(%arg0: i32) -> (i32, i32) {
    %c0_i32 = arith.constant 0 : i32
    %c0_i32_0 = arith.constant 0 : i32
    %c0_i32_1 = arith.constant 0 : i32
    return %c0_i32, %c0_i32_0 : i32, i32
  }
  func.func @transform_8(%arg0: i32) -> (i32, i32) {
    %c0_i32 = arith.constant 0 : i32
    %c0_i32_0 = arith.constant 0 : i32
    %c0_i32_1 = arith.constant 0 : i32
    return %c0_i32, %c0_i32_0 : i32, i32
  }
  func.func @transform_9(%arg0: i32) -> (i32, i32) {
    %c0_i32 = arith.constant 0 : i32
    %c0_i32_0 = arith.constant 0 : i32
    %c0_i32_1 = arith.constant 0 : i32
    return %c0_i32, %c0_i32_0 : i32, i32
  }
  func.func @transform_10(%arg0: i32) -> (i32, i32) {
    %c0_i32 = arith.constant 0 : i32
    %c0_i32_0 = arith.constant 0 : i32
    %c0_i32_1 = arith.constant 0 : i32
    return %c0_i32, %c0_i32_0 : i32, i32
  }
  func.func @transform_11(%arg0: i32) -> (i32, i32) {
    %c0_i32 = arith.constant 0 : i32
    %c0_i32_0 = arith.constant 0 : i32
    %c0_i32_1 = arith.constant 0 : i32
    return %c0_i32, %c0_i32_0 : i32, i32
  }
  func.func @transform_12(%arg0: i32) -> (i32, i32) {
    %c0_i32 = arith.constant 0 : i32
    %c0_i32_0 = arith.constant 0 : i32
    %c0_i32_1 = arith.constant 0 : i32
    return %c0_i32, %c0_i32_0 : i32, i32
  }
  func.func @transform_13(%arg0: i32) -> (i32, i32, i32) {
    %c0_i32 = arith.constant 0 : i32
    %c0_i32_0 = arith.constant 0 : i32
    %c0_i32_1 = arith.constant 0 : i32
    return %arg0, %c0_i32, %c0_i32_0 : i32, i32, i32
  }
}

</mosaic_0001>

<bundles_post_ra>
// kernel: _lambda_.1
= control target key start
LH: loop header
LB: loop body
LE: loop exit
PB: predicated region body
PF: predicated region fallthrough
CT: control target
= control target key end

     0   :  { %s4699_s25 = smov 0   ;;  %s6171_s0 = inlined_call_operand.vmem [shape: f32[2,64,32], index: 0, kind: input, shape index: {}]   ;;  %s6172_s1 = inlined_call_operand.vmem [shape: f32[32,32], index: 1, kind: input, shape index: {}]   ;;  %s6173_s2 = inlined_call_operand.vmem [shape: f32[1,32], index: 2, kind: input, shape index: {}]   ;;  %s6174_s3 = inlined_call_operand.vmem [shape: f32[32,32], index: 3, kind: input, shape index: {}]   ;;  %s6175_s4 = inlined_call_operand.vmem [shape: f32[1,32], index: 4, kind: input, shape index: {}]   ;;  %s6176_s5 = inlined_call_operand.vmem [shape: f32[1,32], index: 5, kind: input, shape index: {}]   ;;  %s6177_s6 = inlined_call_operand.vmem [shape: f32[1,32], index: 6, kind: input, shape index: {}]   ;;  %s6178_s7 = inlined_call_operand.vmem [shape: f32[64,1], index: 7, kind: input, shape index: {}]   ;;  %s6179_s8 = inlined_call_operand.vmem [shape: f32[64,1], index: 8, kind: input, shape index: {}]   ;;  %s6180_s9 = inlined_call_operand.vmem [shape: f32[9,32], index: 9, kind: input, shape index: {}]   ;;  %s6181_s10 = inlined_call_operand.vmem [shape: f32[1,32], index: 10, kind: input, shape index: {}]   ;;  %s6182_s11 = inlined_call_operand.vmem [shape: f32[32,32], index: 11, kind: input, shape index: {}]   ;;  %s6183_s12 = inlined_call_operand.vmem [shape: f32[1,32], index: 12, kind: input, shape index: {}]   ;;  %s6184_s13 = inlined_call_operand.vmem [shape: f32[2,64,32], index: 13, kind: output, shape index: {}]  }
   0x1 LB: > { %s3931_s26 = sadd.s32 4294967295, %s4625_s25   ;;  %p3935_p0 = scmp.ge.s32.totalorder %s4625_s25, 1  ;;  %s4625_s25 = sphi %s4699_s25, %s23_s25  }
   0x2   : > { %p387_p1 = scmp.lt.s32.totalorder %s4625_s25, 3 }
   0x4   : > { %p388_p2 = pnand %p3935_p0, %p387_p1 }
   0x6   : > { %391 = sbr.rel (%p388_p2) target bundleno = 989 (0x3dd), region = 72 }
   0xb   : > { %v452_v0 = vld [vmem:[%s6172_s1 + $0x18] sm:$0xff]  ;;  %v451_v1 = vld [vmem:[%s6172_s1 + $0x10] sm:$0xff]  ;;  %v450_v2 = vld [vmem:[%s6172_s1 + $0x8] sm:$0xff]  ;;  %p431_p3 = scmp.lt.s32.totalorder %s3931_s26, 1  ;;  %vm460_vm0 = vcmask 261120   ;;  %vm2636_vm9 = vcmask 253952  }
   0xc   : > { %v4716_v3 = vand.u32 4294901760, %v452_v0  ;;  %v4718_v4 = vand.u32 4294901760, %v451_v1  ;;  %v4720_v5 = vand.u32 4294901760, %v450_v2  ;;  %v449_v6 = vld [vmem:[%s6172_s1] sm:$0xff] }
   0xd   : > { %v4725_v7 = vand.u32 4294901760, %v449_v6  ;;  %s6283_s26 = smov (!%p431_p3, %s3931_s26), 1 }
   0xe   : > { %4167 = vmatprep.subr.mxu0 %v4716_v3  ;;  %v4731_v8 = vsub.f32 %v452_v0, %v4716_v3  ;;  %v4734_v9 = vsub.f32 %v451_v1, %v4718_v4  ;;  %v4737_v10 = vsub.f32 %v450_v2, %v4720_v5  ;;  %s3949_s18 = sshll.u32 %s6283_s26, 6 }
   0xf   : > { %4168 = vmatpush3.msra.mxu0 %v4716_v3  ;;  %v4741_v11 = vsub.f32 %v449_v6, %v4725_v7  ;;  %s4759_s21 = scalar_lea.vmem %s6171_s0, %s3949_s18  ;;  %s6148_s17 = scalar_lea.vmem %s6184_s13, %s3949_s18 }
  0x10   : > { %v4745_v12 = vand.u32 4294901760, %v4731_v8  ;;  %4169 = vmatprep.subr.mxu0 %v4718_v4  ;;  %v4749_v13 = vand.u32 4294901760, %v4734_v9  ;;  %v4752_v14 = vand.u32 4294901760, %v4737_v10  ;;  %v441_v16 = vld [vmem:[%s4759_s21] sm:$0xff]  ;;  %v442_v17 = vld [vmem:[%s4759_s21 + $0x8] sm:$0xff]  ;;  %v443_v18 = vld [vmem:[%s4759_s21 + $0x10] sm:$0xff] }
  0x11   : > { %4170 = vmatpush3.msra.mxu0 %v4718_v4  ;;  %v4763_v15 = vand.u32 4294901760, %v4741_v11  ;;  %v462_v22 = vsel %vm460_vm0, %v441_v16, 0  ;;  %v444_v23 = vld [vmem:[%s4759_s21 + $0x18] sm:$0xff]  ;;  %v465_v26 = vsel %vm460_vm0, %v442_v17, 0  ;;  %v468_v27 = vsel %vm460_vm0, %v443_v18, 0  ;;  %v445_v28 = vld [vmem:[%s4759_s21 + $0x20] sm:$0xff] }
  0x12   : > { %v662_v19 = vsub.f32 %v4731_v8, %v4745_v12  ;;  %v669_v20 = vsub.f32 %v4734_v9, %v4749_v13  ;;  %4171 = vmatprep.subr.mxu0 %v4720_v5  ;;  %v676_v21 = vsub.f32 %v4737_v10, %v4752_v14  ;;  %v4780_v25 = vand.u32 4294901760, %v462_v22  ;;  %v446_v29 = vld [vmem:[%s4759_s21 + $0x28] sm:$0xff]  ;;  %v447_v38 = vld [vmem:[%s4759_s21 + $0x30] sm:$0xff]  ;;  %v448_v39 = vld [vmem:[%s4759_s21 + $0x38] sm:$0xff] }
  0x13   : > { %4172 = vmatpush3.msra.mxu0 %v4720_v5  ;;  %v683_v24 = vsub.f32 %v4741_v11, %v4763_v15  ;;  %v4787_v33 = vand.u32 4294901760, %v465_v26  ;;  %v4794_v36 = vand.u32 4294901760, %v468_v27  ;;  %v471_v37 = vsel %vm460_vm0, %v444_v23, 0 }
  0x14   : > { %v663_v30 = vand.u32 4294901760, %v662_v19  ;;  %v670_v31 = vand.u32 4294901760, %v669_v20  ;;  %v677_v32 = vand.u32 4294901760, %v676_v21  ;;  %4173 = vmatprep.subr.mxu0 %v4725_v7  ;;  %v4791_v35 = vsub.f32 %v462_v22, %v4780_v25  ;;  %4195 = vmatprep.mubr.f32.mxu1 %v4780_v25 }
  0x15   : > { %4174 = vmatpush3.msra.mxu0 %v4725_v7  ;;  %v684_v34 = vand.u32 4294901760, %v683_v24  ;;  %v4801_v40 = vsub.f32 %v465_v26, %v4787_v33  ;;  %v4803_v41 = vand.u32 4294901760, %v471_v37  ;;  %v474_v42 = vsel %vm460_vm0, %v445_v28, 0  ;;  %v1489_v28 = vld [vmem:[%s6174_s3 + $0x10] sm:$0xff] }
  0x16   : > { %4187 = vmatprep.subr.mxu1 %v663_v30  ;;  %4207 = vmatprep.subr.mxu0 %v4731_v8  ;;  %v477_v43 = vsel %vm460_vm0, %v446_v29, 0  ;;  %v4808_v44 = vand.u32 4294901760, %v4791_v35  ;;  %v4811_v45 = vsub.f32 %v468_v27, %v4794_v36  ;;  %v4813_v46 = vand.u32 4294901760, %v474_v42 }
  0x17   : > { %4188 = vmatpush3.msra.mxu1 %v663_v30  ;;  %v4815_v47 = vand.u32 4294901760, %v477_v43  ;;  %v4818_v48 = vand.u32 4294901760, %v4801_v40  ;;  %v4821_v49 = vsub.f32 %v471_v37, %v4803_v41  ;;  %v480_v50 = vsel %vm460_vm0, %v447_v38, 0  ;;  %v1488_v30 = vld [vmem:[%s6174_s3 + $0x8] sm:$0xff] }
  0x18   : > { %4189 = vmatprep.subr.mxu1 %v670_v31  ;;  %v483_v51 = vsel %vm460_vm0, %v448_v39, 0  ;;  %v557_v52 = vsub.f32 %v4791_v35, %v4808_v44  ;;  %v4828_v53 = vand.u32 4294901760, %v4811_v45  ;;  %v4831_v54 = vsub.f32 %v474_v42, %v4813_v46 }
  0x19   : > { %4190 = vmatpush3.msra.mxu1 %v670_v31  ;;  %v4834_v55 = vsub.f32 %v477_v43, %v4815_v47  ;;  %v567_v56 = vsub.f32 %v4801_v40, %v4818_v48  ;;  %v4839_v57 = vand.u32 4294901760, %v4821_v49  ;;  %v4841_v58 = vand.u32 4294901760, %v480_v50 }
  0x1a   : > { %4191 = vmatprep.subr.mxu1 %v677_v32  ;;  %v4843_v59 = vand.u32 4294901760, %v483_v51  ;;  %v4845_v60 = vand.u32 4294901760, %v557_v52  ;;  %v577_v61 = vsub.f32 %v4811_v45, %v4828_v53  ;;  %v4850_v62 = vand.u32 4294901760, %v4831_v54 }
  0x1b   : > { %4192 = vmatpush3.msra.mxu1 %v677_v32  ;;  %v4853_v63 = vand.u32 4294901760, %v4834_v55  ;;  %v4855_v0 = vand.u32 4294901760, %v567_v56  ;;  %v587_v1 = vsub.f32 %v4821_v49, %v4839_v57  ;;  %v4860_v2 = vsub.f32 %v480_v50, %v4841_v58  ;;  %v1487_v32 = vld [vmem:[%s6174_s3] sm:$0xff] }
  0x1c   : > { %4193 = vmatprep.subr.mxu1 %v684_v34  ;;  %v4863_v6 = vsub.f32 %v483_v51, %v4843_v59  ;;  %4175 = vmatprep.mubr.f32.mxu0 %v4845_v60  ;;  %v4866_v16 = vand.u32 4294901760, %v577_v61  ;;  %v597_v17 = vsub.f32 %v4831_v54, %v4850_v62  ;;  %v4939_v29 = vand.u32 4294901760, %v1489_v28 }
  0x1d   : > { %4194 = vmatpush3.msra.mxu1 %v684_v34  ;;  %4176 = vmatmul.mubr.f32.vlgmr.msra.gmra.mxu0 %v4855_v0  ;;  %v4872_v18 = vand.u32 4294901760, %v587_v1  ;;  %v607_v19 = vsub.f32 %v4834_v55, %v4853_v63  ;;  %v4877_v20 = vand.u32 4294901760, %v4860_v2  ;;  %v4958_v31 = vand.u32 4294901760, %v1488_v30 }
  0x1e   : > { %4196 = vmatmul.mubr.f32.vlgmr.msra.gmra.mxu1 %v4787_v33  ;;  %v4880_v21 = vand.u32 4294901760, %v4863_v6  ;;  %4208 = vmatpush3.msra.mxu0 %v4731_v8  ;;  %v4886_v22 = vand.u32 4294901760, %v597_v17  ;;  %v4979_v37 = vand.u32 4294901760, %v1487_v32 }
  0x1f   : > { %4227 = vmatprep.subr.mxu1 %v4716_v3  ;;  %4178 = vmatprep.mubr.f32.mxu0 %v4866_v16  ;;  %v617_v23 = vsub.f32 %v4860_v2, %v4877_v20  ;;  %v4894_v8 = vand.u32 4294901760, %v607_v19  ;;  %v4977_v34 = vsub.f32 %v1488_v30, %v4958_v31 }
  0x20   : > { %4228 = vmatpush3.msra.mxu1 %v4716_v3  ;;  %4198 = vmatprep.mubr.f32.mxu1 %v4794_v36  ;;  %v627_v24 = vsub.f32 %v4863_v6, %v4880_v21  ;;  %v4995_v39 = vsub.f32 %v1487_v32, %v4979_v37 }
  0x21   : > { %4209 = vmatprep.subr.mxu0 %v4734_v9  ;;  %4179 = vmatmul.mubr.f32.gmra.mxu0 %v4872_v18  ;;  %v4902_v26 = vand.u32 4294901760, %v617_v23 }
  0x22   : > { %4199 = vmatmul.mubr.f32.gmra.mxu1 %v4803_v41  ;;  %4210 = vmatpush3.msra.mxu0 %v4734_v9  ;;  %v4908_v27 = vand.u32 4294901760, %v627_v24  ;;  %v1490_v9 = vld [vmem:[%s6174_s3 + $0x18] sm:$0xff]  ;;  %v5007_v43 = vand.u32 4294901760, %v4995_v39 }
  0x23   : > { %4229 = vmatprep.subr.mxu1 %v4718_v4  ;;  %4181 = vmatprep.mubr.f32.mxu0 %v4886_v22 }
  0x24   : > { %4230 = vmatpush3.msra.mxu1 %v4718_v4  ;;  %4201 = vmatprep.mubr.f32.mxu1 %v4813_v46  ;;  %v1696_v50 = vsub.f32 %v4995_v39, %v5007_v43 }
  0x25   : > { %4211 = vmatprep.subr.mxu0 %v4737_v10  ;;  %4182 = vmatmul.mubr.f32.gmra.mxu0 %v4894_v8 }
  0x26   : > { %4202 = vmatmul.mubr.f32.gmra.mxu1 %v4815_v47  ;;  %4212 = vmatpush3.msra.mxu0 %v4737_v10  ;;  %v4923_v10 = vand.u32 4294901760, %v1490_v9  ;;  %v1697_v51 = vand.u32 4294901760, %v1696_v50 }
  0x27   : > { %4231 = vmatprep.subr.mxu1 %v4720_v5  ;;  %4184 = vmatprep.mubr.f32.mxu0 %v4902_v26 }
  0x28   : > { %4232 = vmatpush3.msra.mxu1 %v4720_v5  ;;  %4204 = vmatprep.mubr.f32.mxu1 %v4841_v58 }
  0x29   : > { %4213 = vmatprep.subr.mxu0 %v4741_v11  ;;  %4185 = vmatmul.mubr.f32.gmra.mxu0 %v4908_v27 }
  0x2a   : > { %4205 = vmatmul.mubr.f32.gmra.mxu1 %v4843_v59  ;;  %4214 = vmatpush3.msra.mxu0 %v4741_v11  ;;  %v4937_v11 = vsub.f32 %v1490_v9, %v4923_v10 }
  0x2b   : > { %4233 = vmatprep.subr.mxu1 %v4725_v7  ;;  %4215 = vmatprep.mubr.f32.mxu0 %v4791_v35 }
  0x2c   : > { %4234 = vmatpush3.msra.mxu1 %v4725_v7  ;;  %4235 = vmatprep.mubr.f32.mxu1 %v4808_v44 }
  0x2d   : > { %4247 = vmatprep.subr.mxu0 %v4745_v12  ;;  %4216 = vmatmul.mubr.f32.vlgmr.msra.gmra.mxu0 %v4801_v40 }
  0x2e   : > { %4236 = vmatmul.mubr.f32.vlgmr.msra.gmra.mxu1 %v4818_v48  ;;  %4248 = vmatpush3.msra.mxu0 %v4745_v12  ;;  %v4956_v12 = vsub.f32 %v1489_v28, %v4939_v29 }
  0x2f   : > { %4267 = vmatprep.subr.mxu1 %v4716_v3  ;;  %4218 = vmatprep.mubr.f32.mxu0 %v4811_v45 }
  0x30   : > { %4268 = vmatpush3.msra.mxu1 %v4716_v3  ;;  %4238 = vmatprep.mubr.f32.mxu1 %v4828_v53  ;;  %v4953_v3 = vand.u32 4294901760, %v4937_v11 }
  0x31   : > { %4249 = vmatprep.subr.mxu0 %v4749_v13  ;;  %4219 = vmatmul.mubr.f32.gmra.mxu0 %v4821_v49 }
  0x32   : > { %4239 = vmatmul.mubr.f32.gmra.mxu1 %v4839_v57  ;;  %4250 = vmatpush3.msra.mxu0 %v4749_v13  ;;  %v4974_v13 = vand.u32 4294901760, %v4956_v12 }
  0x33   : > { %4269 = vmatprep.subr.mxu1 %v4718_v4  ;;  %4221 = vmatprep.mubr.f32.mxu0 %v4831_v54 }
  0x34   : > { %4270 = vmatpush3.msra.mxu1 %v4718_v4  ;;  %4241 = vmatprep.mubr.f32.mxu1 %v4850_v62  ;;  %v1675_v4 = vsub.f32 %v4937_v11, %v4953_v3  ;;  %v1682_v38 = vsub.f32 %v4956_v12, %v4974_v13 }
  0x35   : > { %4251 = vmatprep.subr.mxu0 %v4752_v14  ;;  %4222 = vmatmul.mubr.f32.gmra.mxu0 %v4834_v55 }
  0x36   : > { %4242 = vmatmul.mubr.f32.gmra.mxu1 %v4853_v63  ;;  %4252 = vmatpush3.msra.mxu0 %v4752_v14  ;;  %v1676_v14 = vand.u32 4294901760, %v1675_v4 }
  0x37   : > { %4271 = vmatprep.subr.mxu1 %v4720_v5  ;;  %4224 = vmatprep.mubr.f32.mxu0 %v4860_v2 }
  0x38   : > { %4272 = vmatpush3.msra.mxu1 %v4720_v5  ;;  %4244 = vmatprep.mubr.f32.mxu1 %v4877_v20  ;;  %v4992_v5 = vand.u32 4294901760, %v4977_v34 }
  0x39   : > { %4253 = vmatprep.subr.mxu0 %v4763_v15  ;;  %4225 = vmatmul.mubr.f32.gmra.mxu0 %v4863_v6 }
  0x3a   : > { %4245 = vmatmul.mubr.f32.gmra.mxu1 %v4880_v21  ;;  %4254 = vmatpush3.msra.mxu0 %v4763_v15  ;;  %v1683_v15 = vand.u32 4294901760, %v1682_v38  ;;  %v1689_v42 = vsub.f32 %v4977_v34, %v4992_v5 }
  0x3b   : > { %4273 = vmatprep.subr.mxu1 %v4725_v7  ;;  %4255 = vmatprep.mubr.f32.mxu0 %v4780_v25 }
  0x3c   : > { %4274 = vmatpush3.msra.mxu1 %v4725_v7  ;;  %4275 = vmatprep.mubr.f32.mxu1 %v4780_v25  ;;  %v1690_v7 = vand.u32 4294901760, %v1689_v42 }
  0x3d   : > { %4287 = vmatprep.subr.mxu0 %v4923_v10  ;;  %4256 = vmatmul.mubr.f32.vlgmr.msra.gmra.mxu0 %v4787_v33 }
  0x3e   : > { %4276 = vmatmul.mubr.f32.vlgmr.msra.gmra.mxu1 %v4787_v33  ;;  %4288 = vmatpush3.msra.mxu0 %v4923_v10 }
  0x3f   : > { %4307 = vmatprep.subr.mxu1 %v1676_v14  ;;  %4258 = vmatprep.mubr.f32.mxu0 %v4794_v36 }
  0x40   : > { %4308 = vmatpush3.msra.mxu1 %v1676_v14  ;;  %4278 = vmatprep.mubr.f32.mxu1 %v4794_v36 }
  0x41   : > { %4289 = vmatprep.subr.mxu0 %v4939_v29  ;;  %4259 = vmatmul.mubr.f32.gmra.mxu0 %v4803_v41 }
  0x42   : > { %4279 = vmatmul.mubr.f32.gmra.mxu1 %v4803_v41  ;;  %4290 = vmatpush3.msra.mxu0 %v4939_v29 }
  0x43   : > { %4309 = vmatprep.subr.mxu1 %v1683_v15  ;;  %4261 = vmatprep.mubr.f32.mxu0 %v4813_v46 }
  0x44   : > { %4310 = vmatpush3.msra.mxu1 %v1683_v15  ;;  %4281 = vmatprep.mubr.f32.mxu1 %v4813_v46 }
  0x45   : > { %4291 = vmatprep.subr.mxu0 %v4958_v31  ;;  %4262 = vmatmul.mubr.f32.gmra.mxu0 %v4815_v47 }
  0x46   : > { %4282 = vmatmul.mubr.f32.gmra.mxu1 %v4815_v47  ;;  %4292 = vmatpush3.msra.mxu0 %v4958_v31 }
  0x47   : > { %4311 = vmatprep.subr.mxu1 %v1690_v7  ;;  %4264 = vmatprep.mubr.f32.mxu0 %v4841_v58 }
  0x48   : > { %4312 = vmatpush3.msra.mxu1 %v1690_v7  ;;  %4284 = vmatprep.mubr.f32.mxu1 %v4841_v58 }
  0x49   : > { %4293 = vmatprep.subr.mxu0 %v4979_v37  ;;  %4265 = vmatmul.mubr.f32.gmra.mxu0 %v4843_v59 }
  0x4a   : > { %4285 = vmatmul.mubr.f32.gmra.mxu1 %v4843_v59  ;;  %4294 = vmatpush3.msra.mxu0 %v4979_v37 }
  0x4b   : > { %4313 = vmatprep.subr.mxu1 %v1697_v51  ;;  %4295 = vmatprep.mubr.f32.mxu0 %v4845_v60 }
  0x4c   : > { %4314 = vmatpush3.msra.mxu1 %v1697_v51  ;;  %4315 = vmatprep.mubr.f32.mxu1 %v4780_v25 }
  0x4d   : > { %4327 = vmatprep.subr.mxu0 %v4937_v11  ;;  %4296 = vmatmul.mubr.f32.vlgmr.msra.gmra.mxu0 %v4855_v0 }
  0x4e   : > { %4316 = vmatmul.mubr.f32.vlgmr.msra.gmra.mxu1 %v4787_v33  ;;  %4328 = vmatpush3.msra.mxu0 %v4937_v11 }
  0x4f   : > { %4347 = vmatprep.subr.mxu1 %v4923_v10  ;;  %4298 = vmatprep.mubr.f32.mxu0 %v4866_v16 }
  0x50   : > { %4348 = vmatpush3.msra.mxu1 %v4923_v10  ;;  %4318 = vmatprep.mubr.f32.mxu1 %v4794_v36 }
  0x51   : > { %4329 = vmatprep.subr.mxu0 %v4956_v12  ;;  %4299 = vmatmul.mubr.f32.gmra.mxu0 %v4872_v18 }
  0x52   : > { %4319 = vmatmul.mubr.f32.gmra.mxu1 %v4803_v41  ;;  %4330 = vmatpush3.msra.mxu0 %v4956_v12 }
  0x53   : > { %4349 = vmatprep.subr.mxu1 %v4939_v29  ;;  %4301 = vmatprep.mubr.f32.mxu0 %v4886_v22 }
  0x54   : > { %4350 = vmatpush3.msra.mxu1 %v4939_v29  ;;  %4321 = vmatprep.mubr.f32.mxu1 %v4813_v46 }
  0x55   : > { %4331 = vmatprep.subr.mxu0 %v4977_v34  ;;  %4302 = vmatmul.mubr.f32.gmra.mxu0 %v4894_v8 }
  0x56   : > { %4322 = vmatmul.mubr.f32.gmra.mxu1 %v4815_v47  ;;  %4332 = vmatpush3.msra.mxu0 %v4977_v34 }
  0x57   : > { %4351 = vmatprep.subr.mxu1 %v4958_v31  ;;  %4304 = vmatprep.mubr.f32.mxu0 %v4902_v26 }
  0x58   : > { %4352 = vmatpush3.msra.mxu1 %v4958_v31  ;;  %4324 = vmatprep.mubr.f32.mxu1 %v4841_v58 }
  0x59   : > { %4333 = vmatprep.subr.mxu0 %v4995_v39  ;;  %4305 = vmatmul.mubr.f32.gmra.mxu0 %v4908_v27 }
  0x5a   : > { %4325 = vmatmul.mubr.f32.gmra.mxu1 %v4843_v59  ;;  %4334 = vmatpush3.msra.mxu0 %v4995_v39 }
  0x5b   : > { %4353 = vmatprep.subr.mxu1 %v4979_v37  ;;  %4335 = vmatprep.mubr.f32.mxu0 %v4791_v35 }
  0x5c   : > { %4354 = vmatpush3.msra.mxu1 %v4979_v37  ;;  %4355 = vmatprep.mubr.f32.mxu1 %v4808_v44 }
  0x5d   : > { %4367 = vmatprep.subr.mxu0 %v4953_v3  ;;  %4336 = vmatmul.mubr.f32.vlgmr.msra.gmra.mxu0 %v4801_v40 }
  0x5e   : > { %4356 = vmatmul.mubr.f32.vlgmr.msra.gmra.mxu1 %v4818_v48  ;;  %4368 = vmatpush3.msra.mxu0 %v4953_v3 }
  0x5f   : > { %4387 = vmatprep.subr.mxu1 %v4923_v10  ;;  %4338 = vmatprep.mubr.f32.mxu0 %v4811_v45 }
  0x60   : > { %4388 = vmatpush3.msra.mxu1 %v4923_v10  ;;  %4358 = vmatprep.mubr.f32.mxu1 %v4828_v53 }
  0x61   : > { %4369 = vmatprep.subr.mxu0 %v4974_v13  ;;  %4339 = vmatmul.mubr.f32.gmra.mxu0 %v4821_v49 }
  0x62   : > { %4359 = vmatmul.mubr.f32.gmra.mxu1 %v4839_v57  ;;  %4370 = vmatpush3.msra.mxu0 %v4974_v13 }
  0x63   : > { %4389 = vmatprep.subr.mxu1 %v4939_v29  ;;  %4341 = vmatprep.mubr.f32.mxu0 %v4831_v54 }
  0x64   : > { %4390 = vmatpush3.msra.mxu1 %v4939_v29  ;;  %4361 = vmatprep.mubr.f32.mxu1 %v4850_v62 }
  0x65   : > { %4371 = vmatprep.subr.mxu0 %v4992_v5  ;;  %4342 = vmatmul.mubr.f32.gmra.mxu0 %v4834_v55 }
  0x66   : > { %4362 = vmatmul.mubr.f32.gmra.mxu1 %v4853_v63  ;;  %4372 = vmatpush3.msra.mxu0 %v4992_v5 }
  0x67   : > { %4391 = vmatprep.subr.mxu1 %v4958_v31  ;;  %4344 = vmatprep.mubr.f32.mxu0 %v4860_v2 }
  0x68   : > { %4392 = vmatpush3.msra.mxu1 %v4958_v31  ;;  %4364 = vmatprep.mubr.f32.mxu1 %v4877_v20 }
  0x69   : > { %4373 = vmatprep.subr.mxu0 %v5007_v43  ;;  %4345 = vmatmul.mubr.f32.gmra.mxu0 %v4863_v6 }
  0x6a   : > { %4365 = vmatmul.mubr.f32.gmra.mxu1 %v4880_v21  ;;  %4374 = vmatpush3.msra.mxu0 %v5007_v43 }
  0x6b   : > { %4393 = vmatprep.subr.mxu1 %v4979_v37  ;;  %4375 = vmatprep.mubr.f32.mxu0 %v4780_v25 }
  0x6c   : > { %4394 = vmatpush3.msra.mxu1 %v4979_v37  ;;  %4395 = vmatprep.mubr.f32.mxu1 %v4780_v25  ;;  %v3940_v25 = vld [vmem:[%s6173_s2] ss:$0 sm:$0xff] }
  0x6d   : > { %4376 = vmatmul.mubr.f32.vlgmr.msra.gmra.mxu0 %v4787_v33 }
  0x6e   : > { %4396 = vmatmul.mubr.f32.vlgmr.msra.gmra.mxu1 %v4787_v33  ;;  %4378 = vmatprep.mubr.f32.mxu0 %v4794_v36 }
  0x6f   : > { %4398 = vmatprep.mubr.f32.mxu1 %v4794_v36 }
  0x71   : > { %4379 = vmatmul.mubr.f32.gmra.mxu0 %v4803_v41 }
  0x72   : > { %4399 = vmatmul.mubr.f32.gmra.mxu1 %v4803_v41  ;;  %4381 = vmatprep.mubr.f32.mxu0 %v4813_v46 }
  0x73   : > { %4401 = vmatprep.mubr.f32.mxu1 %v4813_v46 }
  0x75   : > { %4382 = vmatmul.mubr.f32.gmra.mxu0 %v4815_v47 }
  0x76   : > { %4402 = vmatmul.mubr.f32.gmra.mxu1 %v4815_v47  ;;  %4384 = vmatprep.mubr.f32.mxu0 %v4841_v58 }
  0x77   : > { %4404 = vmatprep.mubr.f32.mxu1 %v4841_v58 }
  0x79   : > { %4385 = vmatmul.mubr.f32.gmra.mxu0 %v4843_v59 }
  0x7a   : > { %4405 = vmatmul.mubr.f32.gmra.mxu1 %v4843_v59 }
  0xdd   : > { %v4177_v33 = vpop.f32.mrf.mxu0 }
  0xde   : > { %v4197_v35 = vpop.f32.mrf.mxu1  ;;  %v571_v36 = vadd.f32 %v4177_v33, %v3940_v25 }
  0xdf   : > { %v560_v40 = vpop.f32.mrf.mxu0 }
  0xe0   : > { %v721_v41 = vpop.f32.mrf.mxu1  ;;  %v728_v44 = vadd.f32 %v4197_v35, %v571_v36  ;;  %v561_v45 = vadd.f32 %v3940_v25, %v560_v40 }
  0xe1   : > { %v4180_v46 = vpop.f32.mrf.mxu0 }
  0xe2   : > { %v4200_v47 = vpop.f32.mrf.mxu1  ;;  %v722_v48 = vadd.f32 %v721_v41, %v561_v45  ;;  %v591_v49 = vadd.f32 %v4180_v46, %v3940_v25 }
  0xe3   : > { %v580_v52 = vpop.f32.mrf.mxu0 }
  0xe4   : > { %v733_v53 = vpop.f32.mrf.mxu1  ;;  %v740_v54 = vadd.f32 %v4200_v47, %v591_v49  ;;  %v581_v55 = vadd.f32 %v3940_v25, %v580_v52 }
  0xe5   : > { %v4183_v56 = vpop.f32.mrf.mxu0 }
  0xe6   : > { %v4203_v57 = vpop.f32.mrf.mxu1  ;;  %v734_v58 = vadd.f32 %v733_v53, %v581_v55  ;;  %v611_v59 = vadd.f32 %v4183_v56, %v3940_v25 }
  0xe7   : > { %v600_v60 = vpop.f32.mrf.mxu0 }
  0xe8   : > { %v745_v61 = vpop.f32.mrf.mxu1  ;;  %v752_v62 = vadd.f32 %v4203_v57, %v611_v59  ;;  %v601_v63 = vadd.f32 %v3940_v25, %v600_v60 }
  0xe9   : > { %v4186_v0 = vpop.f32.mrf.mxu0 }
  0xea   : > { %v4206_v1 = vpop.f32.mrf.mxu1  ;;  %v746_v2 = vadd.f32 %v745_v61, %v601_v63  ;;  %v631_v6 = vadd.f32 %v4186_v0, %v3940_v25 }
  0xeb   : > { %v620_v16 = vpop.f32.mrf.mxu0 }
  0xec   : > { %v757_v17 = vpop.f32.mrf.mxu1  ;;  %v764_v18 = vadd.f32 %v4206_v1, %v631_v6  ;;  %v621_v19 = vadd.f32 %v3940_v25, %v620_v16 }
  0xed   : > { %v4217_v20 = vpop.f32.mrf.mxu0 }
  0xee   : > { %v4237_v21 = vpop.f32.mrf.mxu1  ;;  %v758_v22 = vadd.f32 %v757_v17, %v621_v19  ;;  %v851_v23 = vadd.f32 %v4217_v20, %v728_v44 }
  0xef   : > { %v843_v8 = vpop.f32.mrf.mxu0 }
  0xf0   : > { %v969_v24 = vpop.f32.mrf.mxu1  ;;  %v978_v26 = vadd.f32 %v4237_v21, %v851_v23  ;;  %v844_v27 = vadd.f32 %v843_v8, %v722_v48 }
  0xf1   : > { %v4220_v9 = vpop.f32.mrf.mxu0 }
  0xf2   : > { %v4240_v10 = vpop.f32.mrf.mxu1  ;;  %v970_v28 = vadd.f32 %v969_v24, %v844_v27  ;;  %v865_v11 = vadd.f32 %v4220_v9, %v740_v54 }
  0xf3   : > { %v857_v29 = vpop.f32.mrf.mxu0 }
  0xf4   : > { %v985_v30 = vpop.f32.mrf.mxu1  ;;  %v994_v3 = vadd.f32 %v4240_v10, %v865_v11  ;;  %v858_v12 = vadd.f32 %v857_v29, %v734_v58 }
  0xf5   : > { %v4223_v31 = vpop.f32.mrf.mxu0 }
  0xf6   : > { %v4243_v32 = vpop.f32.mrf.mxu1  ;;  %v986_v4 = vadd.f32 %v985_v30, %v858_v12  ;;  %v879_v13 = vadd.f32 %v4223_v31, %v752_v62 }
  0xf7   : > { %v871_v34 = vpop.f32.mrf.mxu0 }
  0xf8   : > { %v1001_v37 = vpop.f32.mrf.mxu1  ;;  %v1010_v14 = vadd.f32 %v4243_v32, %v879_v13  ;;  %v872_v38 = vadd.f32 %v871_v34, %v746_v2 }
  0xf9   : > { %v4226_v5 = vpop.f32.mrf.mxu0 }
  0xfa   : > { %v4246_v39 = vpop.f32.mrf.mxu1  ;;  %v1002_v15 = vadd.f32 %v1001_v37, %v872_v38  ;;  %v893_v42 = vadd.f32 %v4226_v5, %v764_v18 }
  0xfb   : > { %v885_v43 = vpop.f32.mrf.mxu0 }
  0xfc   : > { %v1017_v7 = vpop.f32.mrf.mxu1  ;;  %v1026_v50 = vadd.f32 %v4246_v39, %v893_v42  ;;  %v886_v51 = vadd.f32 %v885_v43, %v758_v22 }
  0xfd   : > { %v4257_v25 = vpop.f32.mrf.mxu0 }
  0xfe   : > { %v4277_v33 = vpop.f32.mrf.mxu1  ;;  %v1018_v35 = vadd.f32 %v1017_v7, %v886_v51  ;;  %v1115_v36 = vadd.f32 %v4257_v25, %v978_v26  ;;  %v3941_v25 = vld [vmem:[%s6175_s4] ss:$0 sm:$0xff] }
  0xff   : > { %v1108_v40 = vpop.f32.mrf.mxu0 }
 0x100   : > { %v1225_v41 = vpop.f32.mrf.mxu1  ;;  %v5112_v44 = vadd.f32 %v4277_v33, %v1115_v36  ;;  %v1109_v45 = vadd.f32 %v1108_v40, %v970_v28 }
 0x101   : > { %v4260_v46 = vpop.f32.mrf.mxu0 }
 0x102   : > { %v4280_v47 = vpop.f32.mrf.mxu1  ;;  %v5114_v48 = vadd.f32 %v1225_v41, %v1109_v45  ;;  %v1127_v49 = vadd.f32 %v4260_v46, %v994_v3 }
 0x103   : > { %v1120_v52 = vpop.f32.mrf.mxu0 }
 0x104   : > { %v1237_v53 = vpop.f32.mrf.mxu1  ;;  %v5116_v54 = vadd.f32 %v4280_v47, %v1127_v49  ;;  %v1121_v55 = vadd.f32 %v1120_v52, %v986_v4 }
 0x105   : > { %v4263_v56 = vpop.f32.mrf.mxu0 }
 0x106   : > { %v4283_v57 = vpop.f32.mrf.mxu1  ;;  %v5118_v58 = vadd.f32 %v1237_v53, %v1121_v55  ;;  %v1139_v59 = vadd.f32 %v4263_v56, %v1010_v14 }
 0x107   : > { %v1132_v60 = vpop.f32.mrf.mxu0 }
 0x108   : > { %6217 = vst [vmem:[#allocation3_spill] sm:$0xff] %v5118_v58  ;;  %v1249_v61 = vpop.f32.mrf.mxu1  ;;  %v5120_v2 = vadd.f32 %v4283_v57, %v1139_v59  ;;  %v1133_v6 = vadd.f32 %v1132_v60, %v1002_v15 }
 0x109   : > { %v4266_v62 = vpop.f32.mrf.mxu0 }
 0x10a   : > { %v4286_v63 = vpop.f32.mrf.mxu1  ;;  %v5122_v18 = vadd.f32 %v1249_v61, %v1133_v6  ;;  %v1151_v21 = vadd.f32 %v4266_v62, %v1026_v50 }
 0x10b   : > { %v1144_v0 = vpop.f32.mrf.mxu0 }
 0x10c   : > { %v1261_v1 = vpop.f32.mrf.mxu1  ;;  %v1145_v22 = vadd.f32 %v1144_v0, %v1018_v35  ;;  %v5124_v24 = vadd.f32 %v4286_v63, %v1151_v21 }
 0x10d   : > { %v4297_v16 = vpop.f32.mrf.mxu0 }
 0x10e   : > { %v4317_v17 = vpop.f32.mrf.mxu1  ;;  %v5126_v26 = vadd.f32 %v1261_v1, %v1145_v22  ;;  %v1584_v33 = vadd.f32 %v4297_v16, %v3941_v25 }
 0x10f   : > { %v1573_v19 = vpop.f32.mrf.mxu0 }
 0x110   : > { %v1734_v20 = vpop.f32.mrf.mxu1  ;;  %v1574_v35 = vadd.f32 %v3941_v25, %v1573_v19  ;;  %v1741_v45 = vadd.f32 %v4317_v17, %v1584_v33 }
 0x111   : > { %v4300_v23 = vpop.f32.mrf.mxu0 }
 0x112   : > { %v4320_v8 = vpop.f32.mrf.mxu1  ;;  %v1604_v41 = vadd.f32 %v4300_v23, %v3941_v25  ;;  %v1735_v46 = vadd.f32 %v1734_v20, %v1574_v35 }
 0x113   : > { %v1593_v27 = vpop.f32.mrf.mxu0 }
 0x114   : > { %v1746_v9 = vpop.f32.mrf.mxu1  ;;  %v1753_v52 = vadd.f32 %v4320_v8, %v1604_v41  ;;  %v1594_v53 = vadd.f32 %v3941_v25, %v1593_v27 }
 0x115   : > { %v4303_v10 = vpop.f32.mrf.mxu0 }
 0x116   : > { %v4323_v28 = vpop.f32.mrf.mxu1  ;;  %v1747_v61 = vadd.f32 %v1746_v9, %v1594_v53  ;;  %v1624_v62 = vadd.f32 %v4303_v10, %v3941_v25 }
 0x117   : > { %v1613_v11 = vpop.f32.mrf.mxu0 }
 0x118   : > { %v1758_v29 = vpop.f32.mrf.mxu1  ;;  %v1614_v1 = vadd.f32 %v3941_v25, %v1613_v11  ;;  %v1765_v22 = vadd.f32 %v4323_v28, %v1624_v62 }
 0x119   : > { %v4306_v30 = vpop.f32.mrf.mxu0 }
 0x11a   : > { %v5128_v3 = vpop.f32.mrf.mxu1 }
 0x11b   : > { %v1633_v12 = vpop.f32.mrf.mxu0 }
 0x11c   : > { %v5130_v31 = vpop.f32.mrf.mxu1  ;;  %v1634_v28 = vadd.f32 %v3941_v25, %v1633_v12 }
 0x11d   : > { %v4337_v32 = vpop.f32.mrf.mxu0 }
 0x11e   : > { %v4357_v4 = vpop.f32.mrf.mxu1  ;;  %v1864_v55 = vadd.f32 %v4337_v32, %v1741_v45  ;;  %v1759_v32 = vadd.f32 %v1758_v29, %v1614_v1 }
 0x11f   : > { %v1856_v13 = vpop.f32.mrf.mxu0 }
 0x120   : > { %v1982_v34 = vpop.f32.mrf.mxu1  ;;  %v1857_v56 = vadd.f32 %v1856_v13, %v1735_v46  ;;  %v1991_v63 = vadd.f32 %v4357_v4, %v1864_v55  ;;  %v1644_v4 = vadd.f32 %v4306_v30, %v3941_v25 }
 0x121   : > { %v4340_v37 = vpop.f32.mrf.mxu0 }
 0x122   : > { %v4360_v14 = vpop.f32.mrf.mxu1  ;;  %v1878_v57 = vadd.f32 %v4340_v37, %v1753_v52  ;;  %v1983_v0 = vadd.f32 %v1982_v34, %v1857_v56  ;;  %v1777_v45 = vadd.f32 %v5128_v3, %v1644_v4 }
 0x123   : > { %v1870_v38 = vpop.f32.mrf.mxu0 }
 0x124   : > { %v1998_v5 = vpop.f32.mrf.mxu1  ;;  %v2007_v6 = vadd.f32 %v4360_v14, %v1878_v57  ;;  %v1871_v16 = vadd.f32 %v1870_v38, %v1747_v61 }
 0x125   : > { %v4343_v39 = vpop.f32.mrf.mxu0 }
 0x126   : > { %v4363_v15 = vpop.f32.mrf.mxu1  ;;  %v1999_v13 = vadd.f32 %v1998_v5, %v1871_v16  ;;  %v1892_v37 = vadd.f32 %v4343_v39, %v1765_v22 }
 0x127   : > { %v1884_v42 = vpop.f32.mrf.mxu0 }
 0x128   : > { %v2014_v43 = vpop.f32.mrf.mxu1  ;;  %v1885_v34 = vadd.f32 %v1884_v42, %v1759_v32  ;;  %v2023_v5 = vadd.f32 %v4363_v15, %v1892_v37 }
 0x129   : > { %v4346_v7 = vpop.f32.mrf.mxu0 }
 0x12a   : > { %v5132_v50 = vpop.f32.mrf.mxu1  ;;  %v2015_v46 = vadd.f32 %v2014_v43, %v1885_v34  ;;  %v1906_v53 = vadd.f32 %v4346_v7, %v1777_v45 }
 0x12b   : > { %v5134_v51 = vpop.f32.mrf.mxu0 }
 0x12c   : > { %v5139_v36 = vpop.f32.mrf.mxu1  ;;  %v2039_v62 = vadd.f32 %v5132_v50, %v1906_v53 }
 0x12d   : > { %v4377_v40 = vpop.f32.mrf.mxu0 }
 0x12e   : > { %v4397_v47 = vpop.f32.mrf.mxu1  ;;  %v2128_v19 = vadd.f32 %v4377_v40, %v1991_v63 }
 0x12f   : > { %v2121_v49 = vpop.f32.mrf.mxu0 }
 0x130   : > { %v2238_v59 = vpop.f32.mrf.mxu1  ;;  %v2122_v21 = vadd.f32 %v2121_v49, %v1983_v0  ;;  %v5141_v23 = vadd.f32 %v4397_v47, %v2128_v19  ;;  %v1771_v47 = vadd.f32 %v5130_v31, %v1634_v28 }
 0x131   : > { %v4380_v60 = vpop.f32.mrf.mxu0 }
 0x132   : > { %v4400_v17 = vpop.f32.mrf.mxu1  ;;  %v5143_v8 = vadd.f32 %v2238_v59, %v2122_v21  ;;  %v2140_v27 = vadd.f32 %v4380_v60, %v2007_v6  ;;  %v5146_v9 = vmul.f32 0.70710677, %v5141_v23  ;;  %v1899_v43 = vadd.f32 %v5134_v51, %v1771_v47 }
 0x133   : > { %v2133_v20 = vpop.f32.mrf.mxu0 }
 0x134   : > { %v2250_v10 = vpop.f32.mrf.mxu1  ;;  %v5149_v14 = vmul.f32 0.70710677, %v5143_v8  ;;  %v5151_v38 = vadd.f32 %v4400_v17, %v2140_v27  ;;  %v2301_v33 = vand.u32 2147483647, %v5146_v9  ;;  %v2134_v35 = vadd.f32 %v2133_v20, %v1999_v13 }
 0x135   : > { %v4383_v11 = vpop.f32.mrf.mxu0  ;;  %v2031_v19 = vadd.f32 %v5139_v36, %v1899_v43  ;;  %vm2461_vm1 = vcmp.lt.f32.partialorder %v5146_v9, 0.0 }
 0x136   : > { %v4403_v40 = vpop.f32.mrf.mxu1  ;;  %v2300_v29 = vand.u32 2147483647, %v5149_v14  ;;  %v2309_v39 = vmul.f32 0.3275911, %v2301_v33  ;;  %v5157_v42 = vmul.f32 0.70710677, %v5151_v38  ;;  %v5160_v12 = vadd.f32 %v2250_v10, %v2134_v35 }
 0x137   : > { %v2145_v41 = vpop.f32.mrf.mxu0  ;;  %v2152_v25 = vadd.f32 %v4383_v11, %v2023_v5  ;;  %v2413_v57 = vsub.f32 0.0, %v2301_v33  ;;  %vm2460_vm2 = vcmp.lt.f32.partialorder %v5149_v14, 0.0 }
 0x138   : > { %v2308_v30 = vmul.f32 0.3275911, %v2300_v29  ;;  %v2317_v49 = vadd.f32 1.0, %v2309_v39  ;;  %v2262_v52 = vpop.f32.mrf.mxu1  ;;  %v2303_v15 = vand.u32 2147483647, %v5157_v42  ;;  %v2146_v56 = vadd.f32 %v2145_v41, %v2015_v46 }
 0x139   : > { %v4386_v3 = vpop.f32.mrf.mxu0  ;;  %v5165_v60 = vmul.f32 0.70710677, %v5160_v12  ;;  %v5167_v31 = vadd.f32 %v4403_v40, %v2152_v25  ;;  %v2421_v0 = vmul.f32 %v2413_v57, %v2301_v33  ;;  %v2412_v1 = vsub.f32 0.0, %v2300_v29 }
 0x13a   : > { %v2316_v55 = vadd.f32 1.0, %v2308_v30  ;;  %4539 = vrcp.f32 %v2317_v49  ;;  %v2311_v59 = vmul.f32 0.3275911, %v2303_v15  ;;  %v4406_v61 = vpop.f32.mrf.mxu1  ;;  %v5170_v63 = vadd.f32 %v2262_v52, %v2146_v56 }
 0x13b   : > { %v2302_v6 = vand.u32 2147483647, %v5165_v60  ;;  %v5174_v16 = vmul.f32 0.70710677, %v5167_v31  ;;  %v2157_v51 = vpop.f32.mrf.mxu0  ;;  %v2164_v21 = vadd.f32 %v4386_v3, %v2039_v62  ;;  %v2430_v13 = vmul.f32 1.442695, %v2421_v0 }
 0x13c   : > { %4541 = vrcp.f32 %v2316_v55  ;;  %v2319_v7 = vadd.f32 1.0, %v2311_v59  ;;  %v5178_v17 = vmul.f32 0.70710677, %v5170_v63  ;;  %v2274_v22 = vpop.f32.mrf.mxu1  ;;  %v2158_v32 = vadd.f32 %v2157_v51, %v2031_v19 }
 0x13d   : > { %v2310_v20 = vmul.f32 0.3275911, %v2302_v6  ;;  %v2305_v50 = vand.u32 2147483647, %v5174_v16  ;;  %v2420_v37 = vmul.f32 %v2412_v1, %v2300_v29  ;;  %v5182_v34 = vadd.f32 %v4406_v61, %v2164_v21 }
 0x13e   : > { %4543 = vrcp.f32 %v2319_v7  ;;  %v2304_v27 = vand.u32 2147483647, %v5178_v17  ;;  %v5184_v36 = vadd.f32 %v2274_v22, %v2158_v32  ;;  %v2415_v28 = vsub.f32 0.0, %v2303_v15 }
 0x13f   : > { %v2318_v10 = vadd.f32 1.0, %v2310_v20  ;;  %v2313_v11 = vmul.f32 0.3275911, %v2305_v50  ;;  %v5187_v40 = vmul.f32 0.70710677, %v5182_v34  ;;  %v2414_v30 = vsub.f32 0.0, %v2302_v6 }
 0x140   : > { %v2312_v4 = vmul.f32 0.3275911, %v2304_v27  ;;  %v2428_v5 = vmul.f32 1.442695, %v2420_v37  ;;  %v5190_v39 = vmul.f32 0.70710677, %v5184_v36  ;;  %v2423_v46 = vmul.f32 %v2415_v28, %v2303_v15 }
 0x141   : > { %4545 = vrcp.f32 %v2318_v10  ;;  %v2321_v33 = vadd.f32 1.0, %v2313_v11  ;;  %v2307_v41 = vand.u32 2147483647, %v5187_v40  ;;  %v2417_v56 = vsub.f32 0.0, %v2305_v50 }
 0x142   : > { %v2320_v35 = vadd.f32 1.0, %v2312_v4  ;;  %4547 = vpow2.f32 %v2430_v13  ;;  %v2306_v47 = vand.u32 2147483647, %v5190_v39  ;;  %v2434_v59 = vmul.f32 1.442695, %v2423_v46 }
 0x143   : > { %4549 = vrcp.f32 %v2321_v33  ;;  %v2315_v25 = vmul.f32 0.3275911, %v2307_v41  ;;  %v2422_v61 = vmul.f32 %v2414_v30, %v2302_v6  ;;  %v4627_v7 = vmov 0  }
 0x144   : > { %4551 = vrcp.f32 %v2320_v35  ;;  %v2314_v53 = vmul.f32 0.3275911, %v2306_v47  ;;  %4538 = vset.pattern.permute.xlu1 %v4627_v7  ;;  %4537 = vset.pattern.permute.xlu0 %v4627_v7  ;;  %v2416_v0 = vsub.f32 0.0, %v2304_v27  ;;  %v2425_v21 = vmul.f32 %v2417_v56, %v2305_v50 }
 0x145   : > { %4553 = vpow2.f32 %v2428_v5  ;;  %v2323_v57 = vadd.f32 1.0, %v2315_v25  ;;  %v5206_v32 = vmul.f32 0.5, %v5141_v23  ;;  %v2419_v6 = vsub.f32 0.0, %v2307_v41 }
 0x146   : > { %v2322_v15 = vadd.f32 1.0, %v2314_v53  ;;  %v2432_v10 = vmul.f32 1.442695, %v2422_v61  ;;  %v2424_v11 = vmul.f32 %v2416_v0, %v2304_v27  ;;  %v5214_v33 = vmul.f32 0.5, %v5143_v8 }
 0x147   : > { %v5192_v29 = vpop.eup %4539  ;;  %4555 = vrcp.f32 %v2323_v57  ;;  %v2418_v50 = vsub.f32 0.0, %v2306_v47  ;;  %v2438_v46 = vmul.f32 1.442695, %v2425_v21  ;;  %v2427_v27 = vmul.f32 %v2419_v6, %v2307_v41 }
 0x148   : > { %v2341_v49 = vmul.f32 1.0614054, %v5192_v29  ;;  %4557 = vrcp.f32 %v2322_v15  ;;  %v2436_v56 = vmul.f32 1.442695, %v2424_v11  ;;  %vm2463_vm3 = vcmp.lt.f32.partialorder %v5157_v42, 0.0 }
 0x149   : > { %v5195_v45 = vpop.eup %4541  ;;  %4559 = vpow2.f32 %v2434_v59  ;;  %v2426_v61 = vmul.f32 %v2418_v50, %v2306_v47  ;;  %vm2462_vm4 = vcmp.lt.f32.partialorder %v5165_v60, 0.0  ;;  %vm2465_vm5 = vcmp.lt.f32.partialorder %v5174_v16, 0.0 }
 0x14a   : > { %v2340_v52 = vmul.f32 1.0614054, %v5195_v45  ;;  %v2349_v55 = vadd.f32 -1.4531521, %v2341_v49  ;;  %4561 = vpow2.f32 %v2432_v10  ;;  %vm2464_vm6 = vcmp.lt.f32.partialorder %v5178_v17, 0.0 }
 0x14b   : > { %v5200_v43 = vpop.eup %4543  ;;  %4563 = vpow2.f32 %v2438_v46  ;;  %vm2467_vm7 = vcmp.lt.f32.partialorder %v5187_v40, 0.0  ;;  %vm2466_vm8 = vcmp.lt.f32.partialorder %v5190_v39, 0.0  ;;  %v2650_v39 = vld [vmem:[%s6178_s7] sm:$0xff] }
 0x14c   : > { %v2348_v3 = vadd.f32 -1.4531521, %v2340_v52  ;;  %v2357_v62 = vmul.f32 %v5192_v29, %v2349_v55  ;;  %v2343_v51 = vmul.f32 1.0614054, %v5200_v43  ;;  %v5220_v52 = vmul.f32 0.5, %v5151_v38 }
 0x14d   : > { %4565 = vpow2.f32 %v2436_v56 }
 0x14e   : > { %v2356_v1 = vmul.f32 %v5195_v45, %v2348_v3  ;;  %v2365_v19 = vadd.f32 1.4214138, %v2357_v62  ;;  %v2351_v22 = vadd.f32 -1.4531521, %v2343_v51  ;;  %v5209_v37 = vpop.eup %4545 }
 0x14f   : > { %v2342_v23 = vmul.f32 1.0614054, %v5209_v37  ;;  %v4548_v5 = vpop.eup %4547 }
 0x150   : > { %v2364_v20 = vadd.f32 1.4214138, %v2356_v1  ;;  %v2373_v13 = vmul.f32 %v5192_v29, %v2365_v19  ;;  %v2359_v28 = vmul.f32 %v5200_v43, %v2351_v22  ;;  %v5217_v25 = vpop.eup %4549  ;;  %v2442_v1 = vmul.f32 1.442695, %v2427_v27 }
 0x151   : > { %v2350_v55 = vadd.f32 -1.4531521, %v2342_v23  ;;  %v2345_v3 = vmul.f32 1.0614054, %v5217_v25  ;;  %v5226_v59 = vpop.eup %4551 }
 0x152   : > { %v2372_v4 = vmul.f32 %v5195_v45, %v2364_v20  ;;  %v2381_v35 = vadd.f32 -0.28449672, %v2373_v13  ;;  %v2367_v49 = vadd.f32 1.4214138, %v2359_v28  ;;  %v4554_v38 = vpop.eup %4553  ;;  %v2344_v0 = vmul.f32 1.0614054, %v5226_v59 }
 0x153   : > { %v2358_v62 = vmul.f32 %v5209_v37, %v2350_v55  ;;  %v2353_v21 = vadd.f32 -1.4531521, %v2345_v3  ;;  %v2440_v13 = vmul.f32 1.442695, %v2426_v61  ;;  %4567 = vpow2.f32 %v2442_v1 }
 0x154   : > { %v2380_v30 = vadd.f32 -0.28449672, %v2372_v4  ;;  %v2389_v53 = vmul.f32 %v5192_v29, %v2381_v35  ;;  %v2375_v57 = vmul.f32 %v5200_v43, %v2367_v49  ;;  %v2352_v22 = vadd.f32 -1.4531521, %v2344_v0  ;;  %v5235_v6 = vpop.eup %4555 }
 0x155   : > { %v2366_v19 = vadd.f32 1.4214138, %v2358_v62  ;;  %v2361_v4 = vmul.f32 %v5217_v25, %v2353_v21  ;;  %v5239_v28 = vpop.eup %4557  ;;  %v2347_v23 = vmul.f32 1.0614054, %v5235_v6  ;;  %4569 = vpow2.f32 %v2440_v13 }
 0x156   : > { %v2388_v8 = vmul.f32 %v5195_v45, %v2380_v30  ;;  %v2397_v15 = vadd.f32 0.2548296, %v2389_v53  ;;  %v2383_v7 = vadd.f32 -0.28449672, %v2375_v57  ;;  %v2360_v35 = vmul.f32 %v5226_v59, %v2352_v22  ;;  %v4560_v49 = vpop.eup %4559 }
 0x157   : > { %v2374_v11 = vmul.f32 %v5209_v37, %v2366_v19  ;;  %v2369_v30 = vadd.f32 1.4214138, %v2361_v4  ;;  %v2346_v55 = vmul.f32 1.0614054, %v5239_v28  ;;  %v2355_v3 = vadd.f32 -1.4531521, %v2347_v23 }
 0x158   : > { %v2396_v41 = vadd.f32 0.2548296, %v2388_v8  ;;  %v2405_v51 = vmul.f32 %v5192_v29, %v2397_v15  ;;  %v2391_v20 = vmul.f32 %v5200_v43, %v2383_v7  ;;  %v2368_v53 = vadd.f32 1.4214138, %v2360_v35 }
 0x159   : > { %v2382_v46 = vadd.f32 -0.28449672, %v2374_v11  ;;  %v2377_v57 = vmul.f32 %v5217_v25, %v2369_v30  ;;  %v4562_v11 = vpop.eup %4561 }
 0x15a   : > { %v2404_v47 = vmul.f32 %v5195_v45, %v2396_v41  ;;  %v2445_v10 = vmul.f32 %v4548_v5, %v2405_v51  ;;  %v2399_v29 = vadd.f32 0.2548296, %v2391_v20  ;;  %v2376_v62 = vmul.f32 %v5226_v59, %v2368_v53 }
 0x15b   : > { %v2390_v8 = vmul.f32 %v5209_v37, %v2382_v46  ;;  %v2385_v0 = vadd.f32 -0.28449672, %v2377_v57 }
 0x15c   : > { %v2444_v50 = vmul.f32 %v4554_v38, %v2404_v47  ;;  %v2453_v45 = vsub.f32 1.0, %v2445_v10  ;;  %v2407_v27 = vmul.f32 %v5200_v43, %v2399_v29  ;;  %v2354_v38 = vadd.f32 -1.4531521, %v2346_v55  ;;  %v4564_v29 = vpop.eup %4563 }
 0x15d   : > { %v2398_v7 = vadd.f32 0.2548296, %v2390_v8  ;;  %v2363_v43 = vmul.f32 %v5235_v6, %v2355_v3  ;;  %v2384_v21 = vadd.f32 -0.28449672, %v2376_v62  ;;  %v2393_v22 = vmul.f32 %v5217_v25, %v2385_v0 }
 0x15e   : > { %v2452_v5 = vsub.f32 1.0, %v2444_v50  ;;  %v2469_v56 = vsub.f32 0.0, %v2453_v45  ;;  %v2447_v15 = vmul.f32 %v4560_v49, %v2407_v27  ;;  %v2362_v10 = vmul.f32 %v5239_v28, %v2354_v38  ;;  %v4566_v49 = vpop.eup %4565 }
 0x15f   : > { %v2406_v20 = vmul.f32 %v5209_v37, %v2398_v7  ;;  %v2392_v4 = vmul.f32 %v5226_v59, %v2384_v21  ;;  %v2371_v50 = vadd.f32 1.4214138, %v2363_v43  ;;  %v2401_v23 = vadd.f32 0.2548296, %v2393_v22 }
 0x160   : > { %v2468_v61 = vsub.f32 0.0, %v2452_v5  ;;  %v2477_v41 = vsel %vm2461_vm1, %v2469_v56, %v2453_v45  ;;  %v2455_v51 = vsub.f32 1.0, %v2447_v15  ;;  %v2370_v45 = vadd.f32 1.4214138, %v2362_v10 }
 0x161   : > { %v2485_v19 = vadd.f32 1.0, %v2477_v41  ;;  %v2446_v35 = vmul.f32 %v4562_v11, %v2406_v20  ;;  %v2400_v30 = vadd.f32 0.2548296, %v2392_v4  ;;  %v2379_v13 = vmul.f32 %v5235_v6, %v2371_v50 }
 0x162   : > { %v2476_v1 = vsel %vm2460_vm2, %v2468_v61, %v2452_v5  ;;  %v2471_v9 = vsub.f32 0.0, %v2455_v51  ;;  %v2378_v42 = vmul.f32 %v5239_v28, %v2370_v45  ;;  %v4568_v61 = vpop.eup %4567  ;;  %v2288_v4 = vmul.f32 0.5, %v5170_v63 }
 0x163   : > { %v2484_v47 = vadd.f32 1.0, %v2476_v1  ;;  %v5264_v46 = vmul.f32 %v2485_v19, %v5206_v32  ;;  %v2454_v53 = vsub.f32 1.0, %v2446_v35  ;;  %v2408_v55 = vmul.f32 %v5226_v59, %v2400_v30  ;;  %v4570_v16 = vpop.eup %4569 }
 0x164   : > { %v2479_v37 = vsel %vm2463_vm3, %v2471_v9, %v2455_v51  ;;  %v2387_v56 = vadd.f32 -0.28449672, %v2379_v13  ;;  %v2286_v32 = vmul.f32 0.5, %v5160_v12  ;;  %v2386_v62 = vadd.f32 -0.28449672, %v2378_v42 }
 0x165   : > { %v5259_v14 = vmul.f32 %v2484_v47, %v5214_v33  ;;  %v2487_v27 = vadd.f32 1.0, %v2479_v37  ;;  %v2409_v33 = vmul.f32 %v5217_v25, %v2401_v23  ;;  %v2470_v57 = vsub.f32 0.0, %v2454_v53 }
 0x166   : > { %v2448_v15 = vmul.f32 %v4566_v49, %v2408_v55  ;;  %v2395_v25 = vmul.f32 %v5235_v6, %v2387_v56  ;;  %v2503_v38 = vsel %vm460_vm0, %v5264_v46, 0.0  ;;  %v2394_v0 = vmul.f32 %v5239_v28, %v2386_v62  ;;  %v2659_v56 = vld [vmem:[%s6179_s8 + $0x8] sm:$0xff] }
 0x167   : > { %v2500_v5 = vsel %vm460_vm0, %v5259_v14, 0.0  ;;  %v5274_v8 = vmul.f32 %v2487_v27, %v5220_v52  ;;  %v2449_v3 = vmul.f32 %v4564_v29, %v2409_v33  ;;  %v2478_v41 = vsel %vm2462_vm4, %v2470_v57, %v2454_v53  ;;  %v2653_v57 = vld [vmem:[%s6178_s7 + $0x18] sm:$0xff] }
 0x168   : > { %2501 = vadd.xlane.f32.xlu0 %v2500_v5  ;;  %v2486_v52 = vadd.f32 1.0, %v2478_v41  ;;  %v2456_v7 = vsub.f32 1.0, %v2448_v15  ;;  %v2403_v43 = vadd.f32 0.2548296, %v2395_v25  ;;  %v2402_v19 = vadd.f32 0.2548296, %v2394_v0 }
 0x169   : > { %v2509_v59 = vsel %vm460_vm0, %v5274_v8, 0.0  ;;  %v2457_v12 = vsub.f32 1.0, %v2449_v3  ;;  %v2289_v47 = vmul.f32 0.5, %v5167_v31  ;;  %v2291_v13 = vmul.f32 0.5, %v5182_v34  ;;  %v2651_v34 = vld [vmem:[%s6178_s7 + $0x8] sm:$0xff]  ;;  %v2660_v3 = vld [vmem:[%s6179_s8 + $0x10] sm:$0xff] }
 0x16a   : > { %2510 = vadd.xlane.f32.xlu1 %v2509_v59  ;;  %v5284_v1 = vmul.f32 %v2486_v52, %v2286_v32  ;;  %v2472_v51 = vsub.f32 0.0, %v2456_v7  ;;  %v2411_v21 = vmul.f32 %v5235_v6, %v2403_v43  ;;  %v2410_v9 = vmul.f32 %v5239_v28, %v2402_v19  ;;  %v2652_v32 = vld [vmem:[%s6178_s7 + $0x10] sm:$0xff]  ;;  %v2654_v15 = vld [vmem:[%s6178_s7 + $0x20] sm:$0xff] }
 0x16b   : > { %v2473_v60 = vsub.f32 0.0, %v2457_v12  ;;  %v2290_v27 = vmul.f32 0.5, %v5184_v36  ;;  %v2658_v36 = vld [vmem:[%s6179_s8] sm:$0xff]  ;;  %v4628_v62 = vmov 0.0  }
 0x16c   : > { %2504 = vadd.xlane.f32.xlu0 %v2503_v38  ;;  %v2506_v22 = vsel %vm460_vm0, %v5284_v1, 0.0  ;;  %v2480_v10 = vsel %vm2464_vm6, %v2472_v51, %v2456_v7  ;;  %v2451_v29 = vmul.f32 %v4568_v61, %v2411_v21  ;;  %v2450_v6 = vmul.f32 %v4570_v16, %v2410_v9  ;;  %v2661_v61 = vld [vmem:[%s6179_s8 + $0x18] sm:$0xff]  ;;  %2635 = vst.msk [vmem:[#allocation2] sm:$0xff] %vm460_vm0, %v4628_v62 }
 0x16d   : > { %v2481_v20 = vsel %vm2465_vm5, %v2473_v60, %v2457_v12  ;;  %v2488_v50 = vadd.f32 1.0, %v2480_v10  ;;  %2637 = vst.msk [vmem:[#allocation2 + $0x8] sm:$0x1] %vm2636_vm9, %v4628_v62  ;;  %2639 = vst.msk [vmem:[#allocation2 + $0x51] sm:$0x1] %vm2636_vm9, %v4628_v62 }
 0x16e   : > { %v2489_v11 = vadd.f32 1.0, %v2481_v20  ;;  %2507 = vadd.xlane.f32.xlu1 %v2506_v22  ;;  %v2459_v17 = vsub.f32 1.0, %v2451_v29  ;;  %v2458_v45 = vsub.f32 1.0, %v2450_v6  ;;  %2638 = vst.msk [vmem:[#allocation2 + $0x49] sm:$0xff] %vm460_vm0, %v4628_v62  ;;  %v5432_v62 = vmul.f32 0.70710677, %v5120_v2 }
 0x16f   : > { %v5295_v31 = vmul.f32 %v2488_v50, %v2288_v4 }
 0x170   : > { %v5293_v35 = vmul.f32 %v2489_v11, %v2289_v47  ;;  %v2475_v28 = vsub.f32 0.0, %v2459_v17  ;;  %v2474_v63 = vsub.f32 0.0, %v2458_v45  ;;  %vm1452_vm13 = vcmp.lt.f32.partialorder %v5432_v62, 0.0 }
 0x171   : > { %v2512_v37 = vsel %vm460_vm0, %v5295_v31, 0.0 }
 0x172   : > { %v2515_v23 = vsel %vm460_vm0, %v5293_v35, 0.0  ;;  %2513 = vadd.xlane.f32.xlu0 %v2512_v37  ;;  %v2483_v30 = vsel %vm2467_vm7, %v2475_v28, %v2459_v17  ;;  %v2482_v49 = vsel %vm2466_vm8, %v2474_v63, %v2458_v45 }
 0x173   : > { %2516 = vadd.xlane.f32.xlu1 %v2515_v23  ;;  %v2491_v5 = vadd.f32 1.0, %v2483_v30  ;;  %v2490_v53 = vadd.f32 1.0, %v2482_v49 }
 0x175   : > { %v5305_v33 = vmul.f32 %v2491_v5, %v2291_v13  ;;  %v5307_v55 = vmul.f32 %v2490_v53, %v2290_v27  ;;  %v2662_v27 = vld [vmem:[%s6179_s8 + $0x20] sm:$0xff]  ;;  %v2656_v53 = vld [vmem:[%s6178_s7 + $0x30] sm:$0xff] }
 0x177   : > { %v2521_v42 = vsel %vm460_vm0, %v5305_v33, 0.0  ;;  %v2518_v40 = vsel %vm460_vm0, %v5307_v55, 0.0 }
 0x178   : > { %2522 = vadd.xlane.f32.xlu1 %v2521_v42  ;;  %2519 = vadd.xlane.f32.xlu0 %v2518_v40  ;;  %v2663_v42 = vld [vmem:[%s6179_s8 + $0x28] sm:$0xff]  ;;  %v2657_v40 = vld [vmem:[%s6178_s7 + $0x38] sm:$0xff] }
 0x189   : > { %2681 = vperm.xlu1 %4538, %v2651_v34   ;;  %v2665_v34 = vld [vmem:[%s6179_s8 + $0x38] sm:$0xff] }
 0x18d   : > { %2780 = vperm.xlu1 %4538, %v2658_v36   ;;  %v5412_v36 = vmul.f32 0.70710677, %v5112_v44 }
 0x18e   : > { %2676 = vperm.xlu0 %4537, %v2650_v39   ;;  %v5415_v39 = vmul.f32 0.70710677, %v5114_v48 }
 0x18f   : > { %vm1448_vm10 = vcmp.lt.f32.partialorder %v5412_v36, 0.0 }
 0x190   : > { %vm1447_vm11 = vcmp.lt.f32.partialorder %v5415_v39, 0.0 }
 0x191   : > { %2785 = vperm.xlu1 %4538, %v2659_v56   ;;  %v5418_v56 = vmul.f32 0.70710677, %v5116_v54 }
 0x193   : > { %vm1450_vm12 = vcmp.lt.f32.partialorder %v5418_v56, 0.0 }
 0x195   : > { %2686 = vperm.xlu1 %4538, %v2652_v32   ;;  %v5421_v32 = vand.u32 2147483647, %v5412_v36 }
 0x199   : > { %2691 = vperm.xlu1 %4538, %v2653_v57   ;;  %v5424_v57 = vand.u32 2147483647, %v5415_v39  ;;  %v5652_v39 = vmul.f32 0.5, %v5124_v24 }
 0x19b   : > { %6233 = vst [vmem:[#allocation19_spill] sm:$0xff] %v5652_v39 }
 0x19d   : > { %2790 = vperm.xlu1 %4538, %v2660_v3   ;;  %v5427_v3 = vand.u32 2147483647, %v5418_v56 }
 0x1a1   : > { %2795 = vperm.xlu1 %4538, %v2661_v61   ;;  %v1296_v61 = vmul.f32 0.3275911, %v5421_v32 }
 0x1a5   : > { %2696 = vperm.xlu1 %4538, %v2654_v15   ;;  %v1295_v15 = vmul.f32 0.3275911, %v5424_v57 }
 0x1f1   : > { %v2502_v25 = vpop.xlane.xlu0 %2501 }
 0x1f2   : > { %v2525_v59 = vmul.f32 0.03125, %v2502_v25  ;;  %v5435_v25 = vmul.f32 0.70710677, %v5118_v58 }
 0x1f3   : > { %v2511_v41 = vpop.xlane.xlu1 %2510 }
 0x1f4   : > { %v5343_v38 = vsub.f32 %v5259_v14, %v2525_v59  ;;  %v2528_v52 = vmul.f32 0.03125, %v2511_v41  ;;  %v1298_v59 = vmul.f32 0.3275911, %v5427_v3  ;;  %v5439_v41 = vmul.f32 0.70710677, %v5122_v18 }
 0x1f5   : > { %v2505_v12 = vpop.xlane.xlu0 %2504  ;;  %vm1449_vm14 = vcmp.lt.f32.partialorder %v5435_v25, 0.0 }
 0x1f6   : > { %v2526_v7 = vmul.f32 0.03125, %v2505_v12  ;;  %v2541_v0 = vmul.f32 %v5343_v38, %v5343_v38  ;;  %v5348_v43 = vsub.f32 %v5274_v8, %v2528_v52  ;;  %v1304_v12 = vadd.f32 1.0, %v1296_v61 }
 0x1f7   : > { %v2508_v19 = vpop.xlane.xlu1 %2507  ;;  %v1303_v52 = vadd.f32 1.0, %v1295_v15  ;;  %vm1451_vm15 = vcmp.lt.f32.partialorder %v5439_v41, 0.0 }
 0x1f8   : > { %v5351_v60 = vsub.f32 %v5264_v46, %v2526_v7  ;;  %v2549_v51 = vsel %vm460_vm0, %v2541_v0, 0.0  ;;  %v2527_v21 = vmul.f32 0.03125, %v2508_v19  ;;  %v2544_v20 = vmul.f32 %v5348_v43, %v5348_v43 }
 0x1f9   : > { %2550 = vadd.xlane.f32.xlu0 %v2549_v51  ;;  %v5442_v7 = vand.u32 2147483647, %v5432_v62  ;;  %v5445_v0 = vmul.f32 0.70710677, %v5126_v26  ;;  %v3050_v51 = vld [vmem:[%s6182_s11 + $0x18] sm:$0xff]  ;;  %4571 = vrcp.f32 %v1304_v12  ;;  %v2666_v62 = vld [vmem:[#allocation2] sm:$0xff] }
 0x1fa   : > { %v2542_v14 = vmul.f32 %v5351_v60, %v5351_v60  ;;  %v5360_v22 = vsub.f32 %v5284_v1, %v2527_v21  ;;  %v2558_v16 = vsel %vm460_vm0, %v2544_v20, 0.0  ;;  %v5451_v19 = vand.u32 2147483647, %v5435_v25 }
 0x1fb   : > { %v2514_v46 = vpop.xlane.xlu0 %2513  ;;  %v1306_v21 = vadd.f32 1.0, %v1298_v59  ;;  %v5459_v20 = vmul.f32 0.70710677, %v5124_v24  ;;  %4573 = vrcp.f32 %v1303_v52  ;;  %v5663_v24 = vld [vmem:[%s6176_s5] ss:$0 sm:$0xff]  ;;  %vm1453_vm2 = vcmp.lt.f32.partialorder %v5445_v0, 0.0 }
 0x1fc   : > { %v2552_v47 = vsel %vm460_vm0, %v2542_v14, 0.0  ;;  %v2517_v8 = vpop.xlane.xlu1 %2516  ;;  %v2543_v11 = vmul.f32 %v5360_v22, %v5360_v22  ;;  %v2529_v9 = vmul.f32 0.03125, %v2514_v46  ;;  %v5453_v14 = vand.u32 4294901760, %v3050_v51 }
 0x1fd   : > { %2553 = vadd.xlane.f32.xlu1 %v2552_v47  ;;  %v2530_v10 = vmul.f32 0.03125, %v2517_v8  ;;  %v5456_v47 = vand.u32 2147483647, %v5439_v41  ;;  %v3049_v8 = vld [vmem:[%s6182_s11 + $0x10] sm:$0xff]  ;;  %4575 = vrcp.f32 %v1306_v21  ;;  %vm1454_vm1 = vcmp.lt.f32.partialorder %v5459_v20, 0.0 }
 0x1fe   : > { %v2555_v50 = vsel %vm460_vm0, %v2543_v11, 0.0  ;;  %v5370_v29 = vsub.f32 %v5295_v31, %v2529_v9  ;;  %6219 = vst [vmem:[#allocation5_spill] sm:$0xff] %v5453_v14  ;;  %4407 = vmatprep.subr.mxu0 %v5453_v14  ;;  %v5466_v46 = vsub.f32 %v3050_v51, %v5453_v14  ;;  %v1300_v11 = vmul.f32 0.3275911, %v5442_v7 }
 0x1ff   : > { %v5366_v4 = vsub.f32 %v5293_v35, %v2530_v10  ;;  %2556 = vadd.xlane.f32.xlu0 %v2555_v50  ;;  %v5468_v10 = vand.u32 4294901760, %v3049_v8  ;;  %v5472_v9 = vand.u32 2147483647, %v5445_v0  ;;  %4408 = vmatpush3.msra.mxu0 %v5453_v14  ;;  %v1297_v50 = vmul.f32 0.3275911, %v5451_v19 }
 0x200   : > { %v2545_v6 = vmul.f32 %v5370_v29, %v5370_v29  ;;  %6220 = vst [vmem:[#allocation6_spill] sm:$0xff] %v5466_v46 }
 0x201   : > { %2559 = vadd.xlane.f32.xlu1 %v2558_v16  ;;  %v2546_v1 = vmul.f32 %v5366_v4, %v5366_v4  ;;  %v2523_v23 = vpop.xlane.xlu1 %2522  ;;  %v2520_v35 = vpop.xlane.xlu0 %2519  ;;  %6221 = vst [vmem:[#allocation7_spill] sm:$0xff] %v5468_v10  ;;  %v3048_v16 = vld [vmem:[%s6182_s11 + $0x8] sm:$0xff]  ;;  %4409 = vmatprep.subr.mxu0 %v5468_v10 }
 0x202   : > { %v2561_v45 = vsel %vm460_vm0, %v2545_v6, 0.0  ;;  %v2532_v37 = vmul.f32 0.03125, %v2523_v23  ;;  %v2531_v28 = vmul.f32 0.03125, %v2520_v35  ;;  %v5483_v6 = vsub.f32 %v3049_v8, %v5468_v10  ;;  %4410 = vmatpush3.msra.mxu0 %v5468_v10  ;;  %v3047_v35 = vld [vmem:[%s6182_s11] sm:$0xff] }
 0x203   : > { %v2564_v17 = vsel %vm460_vm0, %v2546_v1, 0.0  ;;  %2562 = vadd.xlane.f32.xlu0 %v2561_v45  ;;  %v5480_v1 = vand.u32 4294901760, %v5466_v46  ;;  %v1299_v23 = vmul.f32 0.3275911, %v5456_v47  ;;  %v5490_v45 = vand.u32 2147483647, %v5459_v20 }
 0x204   : > { %v5379_v31 = vsub.f32 %v5305_v33, %v2532_v37  ;;  %v5382_v63 = vsub.f32 %v5307_v55, %v2531_v28  ;;  %v2655_v33 = vld [vmem:[%s6178_s7 + $0x28] sm:$0xff]  ;;  %v2664_v55 = vld [vmem:[%s6179_s8 + $0x30] sm:$0xff]  ;;  %6223 = vst [vmem:[#allocation9_spill] sm:$0xff] %v5483_v6  ;;  %v5499_v28 = vand.u32 4294901760, %v5483_v6 }
 0x205   : > { %2565 = vadd.xlane.f32.xlu1 %v2564_v17  ;;  %6222 = vst [vmem:[#allocation8_spill] sm:$0xff] %v5480_v1  ;;  %v5486_v17 = vand.u32 4294901760, %v3048_v16  ;;  %v3259_v37 = vsub.f32 %v5466_v46, %v5480_v1  ;;  %v5528_v8 = vpop.permute.xlu1 %2681 }
 0x206   : > { %6218 = vst [vmem:[#allocation4_spill] sm:$0xff] %v5382_v63  ;;  %v2548_v30 = vmul.f32 %v5379_v31, %v5379_v31  ;;  %v2547_v13 = vmul.f32 %v5382_v63, %v5382_v63  ;;  %6225 = vst [vmem:[#allocation11_spill] sm:$0xff] %v5499_v28 }
 0x207   : > { %6224 = vst [vmem:[#allocation10_spill] sm:$0xff] %v5486_v17  ;;  %4411 = vmatprep.subr.mxu0 %v5486_v17 }
 0x208   : > { %v2570_v49 = vsel %vm460_vm0, %v2548_v30, 0.0  ;;  %v2567_v5 = vsel %vm460_vm0, %v2547_v13, 0.0  ;;  %v5502_v30 = vsub.f32 %v3048_v16, %v5486_v17  ;;  %v5504_v13 = vand.u32 4294901760, %v3047_v35  ;;  %4412 = vmatpush3.msra.mxu0 %v5486_v17  ;;  %v5530_v16 = vpop.eup %4571 }
 0x209   : > { %2571 = vadd.xlane.f32.xlu1 %v2570_v49  ;;  %2568 = vadd.xlane.f32.xlu0 %v2567_v5  ;;  %v1308_v49 = vadd.f32 1.0, %v1300_v11  ;;  %v1301_v5 = vmul.f32 0.3275911, %v5472_v9 }
 0x20a   : > { %6226 = vst [vmem:[#allocation12_spill] sm:$0xff] %v5502_v30  ;;  %6227 = vst [vmem:[#allocation13_spill] sm:$0xff] %v5504_v13  ;;  %4413 = vmatprep.subr.mxu0 %v5504_v13 }
 0x20b   : > { %4414 = vmatpush3.msra.mxu0 %v5504_v13  ;;  %v1309_v12 = vadd.f32 1.0, %v1301_v5  ;;  %4577 = vrcp.f32 %v1308_v49 }
 0x20c   : > { %4447 = vmatprep.subr.mxu0 %v5466_v46 }
 0x21a   : > { %2800 = vperm.xlu1 %4538, %v2662_v27   ;;  %v3260_v27 = vand.u32 4294901760, %v3259_v37  ;;  %v5538_v37 = vpop.permute.xlu1 %2780 }
 0x21c   : > { %4427 = vmatprep.subr.mxu1 %v3260_v27 }
 0x21d   : > { %4428 = vmatpush3.msra.mxu1 %v3260_v27 }
 0x21e   : > { %2706 = vperm.xlu1 %4538, %v2656_v53   ;;  %v3266_v53 = vsub.f32 %v5483_v6, %v5499_v28 }
 0x21f   : > { %2701 = vperm.xlu0 %4537, %v2655_v33   ;;  %v5512_v33 = vand.u32 4294901760, %v5502_v30 }
 0x220   : > { %v3267_v61 = vand.u32 4294901760, %v3266_v53 }
 0x221   : > { %6228 = vst [vmem:[#allocation14_spill] sm:$0xff] %v5512_v33  ;;  %v3273_v15 = vsub.f32 %v5502_v30, %v5512_v33 }
 0x222   : > { %2810 = vperm.xlu1 %4538, %v2664_v55   ;;  %v5515_v55 = vsub.f32 %v3047_v35, %v5504_v13  ;;  %4429 = vmatprep.subr.mxu1 %v3267_v61  ;;  %v1328_v35 = vmul.f32 1.0614054, %v5530_v16 }
 0x223   : > { %2805 = vperm.xlu0 %4537, %v2663_v42   ;;  %v1305_v42 = vadd.f32 1.0, %v1297_v50  ;;  %v3274_v52 = vand.u32 4294901760, %v3273_v15  ;;  %4430 = vmatpush3.msra.mxu1 %v3267_v61  ;;  %v5532_v50 = vpop.eup %4573 }
 0x224   : > { %6229 = vst [vmem:[#allocation15_spill] sm:$0xff] %v5515_v55  ;;  %v5523_v59 = vand.u32 4294901760, %v5515_v55  ;;  %v1327_v49 = vmul.f32 1.0614054, %v5532_v50  ;;  %v1336_v27 = vadd.f32 -1.4531521, %v1328_v35 }
 0x225   : > { %4579 = vrcp.f32 %v1305_v42  ;;  %4431 = vmatprep.subr.mxu1 %v3274_v52 }
 0x226   : > { %6230 = vst [vmem:[#allocation16_spill] sm:$0xff] %v5523_v59  ;;  %v3280_v51 = vsub.f32 %v5515_v55, %v5523_v59  ;;  %4432 = vmatpush3.msra.mxu1 %v3274_v52  ;;  %v1335_v53 = vadd.f32 -1.4531521, %v1327_v49  ;;  %v1399_v59 = vsub.f32 0.0, %v5424_v57 }
 0x227   : > { %2711 = vperm.xlu0 %4537, %v2657_v40   ;;  %v1302_v40 = vmul.f32 0.3275911, %v5490_v45 }
 0x228   : > { %v3281_v11 = vand.u32 4294901760, %v3280_v51  ;;  %v1343_v51 = vmul.f32 %v5532_v50, %v1335_v53  ;;  %v1407_v17 = vmul.f32 %v1399_v59, %v5424_v57 }
 0x229   : > { %v1310_v21 = vadd.f32 1.0, %v1302_v40  ;;  %v5544_v40 = vpop.permute.xlu1 %2785 }
 0x22a   : > { %4433 = vmatprep.subr.mxu1 %v3281_v11  ;;  %v1351_v55 = vadd.f32 1.4214138, %v1343_v51 }
 0x22b   : > { %2815 = vperm.xlu0 %4537, %v2665_v34   ;;  %v1307_v34 = vadd.f32 1.0, %v1299_v23  ;;  %4434 = vmatpush3.msra.mxu1 %v3281_v11  ;;  %v5534_v23 = vpop.eup %4575  ;;  %v1400_v11 = vsub.f32 0.0, %v5421_v32 }
 0x22c   : > { %4467 = vmatprep.subr.mxu1 %v5453_v14  ;;  %v1330_v5 = vmul.f32 1.0614054, %v5534_v23  ;;  %v5542_v42 = vpop.eup %4577  ;;  %v1359_v63 = vmul.f32 %v5532_v50, %v1351_v55 }
 0x22d   : > { %4581 = vrcp.f32 %v1307_v34  ;;  %v5564_v53 = vpop.permute.xlu1 %2686  ;;  %v1408_v6 = vmul.f32 %v1400_v11, %v5421_v32 }
 0x22e   : > { %4583 = vrcp.f32 %v1309_v12  ;;  %v1338_v61 = vadd.f32 -1.4531521, %v1330_v5  ;;  %v1344_v12 = vmul.f32 %v5530_v16, %v1336_v27  ;;  %v1402_v27 = vsub.f32 0.0, %v5427_v3  ;;  %6231 = vst [vmem:[#allocation17_spill] sm:$0xff] %v5564_v53 }
 0x22f   : > { %4585 = vrcp.f32 %v1310_v21  ;;  %v1332_v21 = vmul.f32 1.0614054, %v5542_v42  ;;  %v1417_v51 = vmul.f32 1.442695, %v1408_v6 }
 0x230   : > { %v1346_v5 = vmul.f32 %v5534_v23, %v1338_v61  ;;  %v1352_v28 = vadd.f32 1.4214138, %v1344_v12  ;;  %v1410_v12 = vmul.f32 %v1402_v27, %v5427_v3 }
 0x231   : > { %v1340_v30 = vadd.f32 -1.4531521, %v1332_v21  ;;  %v5574_v11 = vpop.permute.xlu1 %2691  ;;  %4587 = vpow2.f32 %v1417_v51 }
 0x232   : > { %v5546_v34 = vpop.eup %4579  ;;  %v1354_v10 = vadd.f32 1.4214138, %v1346_v5  ;;  %v1360_v14 = vmul.f32 %v5530_v16, %v1352_v28  ;;  %v1421_v3 = vmul.f32 1.442695, %v1410_v12 }
 0x233   : > { %v1329_v35 = vmul.f32 1.0614054, %v5546_v34  ;;  %v1348_v53 = vmul.f32 %v5542_v42, %v1340_v30  ;;  %v1367_v30 = vadd.f32 -0.28449672, %v1359_v63 }
 0x234   : > { %v1362_v57 = vmul.f32 %v5534_v23, %v1354_v10  ;;  %v1368_v59 = vadd.f32 -0.28449672, %v1360_v14  ;;  %v1405_v10 = vsub.f32 0.0, %v5472_v9 }
 0x235   : > { %v1337_v46 = vadd.f32 -1.4531521, %v1329_v35  ;;  %v1415_v35 = vmul.f32 1.442695, %v1407_v17  ;;  %v1356_v6 = vadd.f32 1.4214138, %v1348_v53  ;;  %v5588_v53 = vpop.permute.xlu1 %2790  ;;  %v1375_v51 = vmul.f32 %v5532_v50, %v1367_v30 }
 0x236   : > { %v1370_v5 = vadd.f32 -0.28449672, %v1362_v57  ;;  %6232 = vst [vmem:[#allocation18_spill] sm:$0xff] %v5588_v53  ;;  %v1413_v57 = vmul.f32 %v1405_v10, %v5472_v9 }
 0x237   : > { %v1345_v21 = vmul.f32 %v5546_v34, %v1337_v46  ;;  %v1403_v46 = vsub.f32 0.0, %v5456_v47  ;;  %4589 = vpow2.f32 %v1415_v35  ;;  %v1383_v30 = vadd.f32 0.2548296, %v1375_v51 }
 0x238   : > { %4591 = vpow2.f32 %v1421_v3 }
 0x23a   : > { %v5548_v15 = vpop.eup %4581 }
 0x23b   : > { %v5551_v52 = vpop.eup %4583  ;;  %v1331_v33 = vmul.f32 1.0614054, %v5548_v15 }
 0x23c   : > { %v5557_v49 = vpop.eup %4585  ;;  %v1333_v1 = vmul.f32 1.0614054, %v5551_v52 }
 0x23d   : > { %v1334_v13 = vmul.f32 1.0614054, %v5557_v49  ;;  %v1339_v61 = vadd.f32 -1.4531521, %v1331_v33  ;;  %v1404_v33 = vsub.f32 0.0, %v5442_v7 }
 0x23e   : > { %v1341_v58 = vadd.f32 -1.4531521, %v1333_v1  ;;  %v1401_v1 = vsub.f32 0.0, %v5451_v19  ;;  %v4588_v51 = vpop.eup %4587 }
 0x23f   : > { %v1342_v32 = vadd.f32 -1.4531521, %v1334_v13  ;;  %v1347_v28 = vmul.f32 %v5548_v15, %v1339_v61  ;;  %v1353_v13 = vadd.f32 1.4214138, %v1345_v21  ;;  %v1412_v27 = vmul.f32 %v1404_v33, %v5442_v7 }
 0x240   : > { %v1349_v55 = vmul.f32 %v5551_v52, %v1341_v58  ;;  %v1376_v61 = vmul.f32 %v5530_v16, %v1368_v59  ;;  %v1409_v12 = vmul.f32 %v1401_v1, %v5451_v19  ;;  %v1406_v58 = vsub.f32 0.0, %v5490_v45 }
 0x241   : > { %v1350_v17 = vmul.f32 %v5557_v49, %v1342_v32  ;;  %v1355_v14 = vadd.f32 1.4214138, %v1347_v28  ;;  %v1364_v21 = vmul.f32 %v5542_v42, %v1356_v6  ;;  %v1411_v32 = vmul.f32 %v1403_v46, %v5456_v47 }
 0x242   : > { %v1357_v63 = vadd.f32 1.4214138, %v1349_v55  ;;  %v1361_v35 = vmul.f32 %v5546_v34, %v1353_v13  ;;  %v1378_v33 = vmul.f32 %v5534_v23, %v1370_v5  ;;  %v1425_v19 = vmul.f32 1.442695, %v1412_v27 }
 0x243   : > { %v1358_v7 = vadd.f32 1.4214138, %v1350_v17  ;;  %v1363_v28 = vmul.f32 %v5548_v15, %v1355_v14  ;;  %v1384_v59 = vadd.f32 0.2548296, %v1376_v61  ;;  %v1419_v1 = vmul.f32 1.442695, %v1409_v12  ;;  %v5600_v17 = vpop.permute.xlu1 %2795 }
 0x244   : > { %v1414_v55 = vmul.f32 %v1406_v58, %v5490_v45  ;;  %v1365_v3 = vmul.f32 %v5551_v52, %v1357_v63  ;;  %v1372_v6 = vadd.f32 -0.28449672, %v1364_v21  ;;  %v1423_v53 = vmul.f32 1.442695, %v1411_v32  ;;  %v5603_v45 = vpop.permute.xlu0 %2676 }
 0x245   : > { %v1369_v47 = vadd.f32 -0.28449672, %v1361_v35  ;;  %v1366_v46 = vmul.f32 %v5557_v49, %v1358_v7  ;;  %v1427_v13 = vmul.f32 1.442695, %v1413_v57  ;;  %v1386_v9 = vadd.f32 0.2548296, %v1378_v33 }
 0x246   : > { %4593 = vpow2.f32 %v1425_v19  ;;  %v1371_v10 = vadd.f32 -0.28449672, %v1363_v28  ;;  %v1392_v5 = vmul.f32 %v5530_v16, %v1384_v59  ;;  %v1429_v27 = vmul.f32 1.442695, %v1414_v55  ;;  %v4590_v16 = vpop.eup %4589 }
 0x247   : > { %4595 = vpow2.f32 %v1419_v1  ;;  %v1373_v14 = vadd.f32 -0.28449672, %v1365_v3  ;;  %v1391_v61 = vmul.f32 %v5532_v50, %v1383_v30  ;;  %v1380_v12 = vmul.f32 %v5542_v42, %v1372_v6  ;;  %v5611_v57 = vpop.permute.xlu1 %2696  ;;  %v4592_v28 = vpop.eup %4591 }
 0x248   : > { %4597 = vpow2.f32 %v1423_v53  ;;  %v1377_v58 = vmul.f32 %v5546_v34, %v1369_v47  ;;  %v1374_v63 = vadd.f32 -0.28449672, %v1366_v46  ;;  %v1394_v21 = vmul.f32 %v5534_v23, %v1386_v9 }
 0x249   : > { %4599 = vpow2.f32 %v1427_v13  ;;  %v1379_v32 = vmul.f32 %v5548_v15, %v1371_v10  ;;  %v1432_v35 = vmul.f32 %v4588_v51, %v1392_v5  ;;  %v1381_v7 = vmul.f32 %v5551_v52, %v1373_v14 }
 0x24a   : > { %4601 = vpow2.f32 %v1429_v27  ;;  %v1431_v33 = vmul.f32 %v4590_v16, %v1391_v61  ;;  %v1388_v19 = vadd.f32 0.2548296, %v1380_v12  ;;  %v1385_v59 = vadd.f32 0.2548296, %v1377_v58 }
 0x24b   : > { %v1382_v1 = vmul.f32 %v5557_v49, %v1374_v63  ;;  %v1434_v55 = vmul.f32 %v4592_v28, %v1394_v21  ;;  %v1387_v3 = vadd.f32 0.2548296, %v1379_v32  ;;  %v1440_v30 = vsub.f32 1.0, %v1432_v35 }
 0x24c   : > { %v1389_v6 = vadd.f32 0.2548296, %v1381_v7  ;;  %v1439_v46 = vsub.f32 1.0, %v1431_v33  ;;  %v1396_v13 = vmul.f32 %v5542_v42, %v1388_v19  ;;  %v5616_v10 = vmul.f32 0.5, %v5112_v44 }
 0x24d   : > { %v1393_v5 = vmul.f32 %v5546_v34, %v1385_v59  ;;  %v1390_v27 = vadd.f32 0.2548296, %v1382_v1  ;;  %v5621_v14 = vmul.f32 0.5, %v5114_v48  ;;  %v1442_v61 = vsub.f32 1.0, %v1434_v55 }
 0x24e   : > { %v1395_v12 = vmul.f32 %v5548_v15, %v1387_v3  ;;  %v1456_v51 = vsub.f32 0.0, %v1440_v30  ;;  %v5626_v42 = vmul.f32 0.5, %v5116_v54  ;;  %v1397_v44 = vmul.f32 %v5551_v52, %v1389_v6 }
 0x24f   : > { %v1455_v34 = vsub.f32 0.0, %v1439_v46  ;;  %v1458_v54 = vsub.f32 0.0, %v1442_v61  ;;  %v5638_v59 = vmul.f32 0.5, %v5122_v18  ;;  %v2722_v55 = vlaneseq }
 0x250   : > { %v2714_v41 = vmul.f32 %v5603_v45, %v2666_v62 }
 0x251   : > { %v1463_v6 = vsel %vm1447_vm11, %v1455_v34, %v1439_v46  ;;  %v1466_v36 = vsel %vm1450_vm12, %v1458_v54, %v1442_v61 }
 0x252   : > { %v1474_v56 = vadd.f32 1.0, %v1466_v36 }
 0x253   : > { %v4594_v63 = vpop.eup %4593 }
 0x254   : > { %v4596_v32 = vpop.eup %4595  ;;  %v1436_v16 = vmul.f32 %v4594_v63, %v1396_v13 }
 0x255   : > { %v4598_v7 = vpop.eup %4597  ;;  %v5630_v15 = vmul.f32 %v4596_v32, %v1393_v5 }
 0x256   : > { %v4600_v19 = vpop.eup %4599  ;;  %v1435_v52 = vmul.f32 %v4598_v7, %v1395_v12 }
 0x257   : > { %v5640_v1 = vmul.f32 %v4600_v19, %v1397_v44  ;;  %v1441_v13 = vsub.f32 1.0, %v5630_v15 }
 0x259   : > { %v1445_v12 = vsub.f32 1.0, %v5640_v1  ;;  %v1457_v61 = vsub.f32 0.0, %v1441_v13  ;;  %v5690_v1 = vmul.f32 %v1474_v56, %v5626_v42 }
 0x25b   : > { %v1461_v7 = vsub.f32 0.0, %v1445_v12  ;;  %6236 = vst [vmem:[#allocation22_spill] sm:$0xff] %v5690_v1 }
 0x25d   : > { %v1469_v42 = vsel %vm1453_vm2, %v1461_v7, %v1445_v12 }
 0x282   : > { %v2551_v50 = vpop.xlane.xlu0 %2550 }
 0x283   : > { %v2573_v53 = vmul.f32 0.03125, %v2551_v50  ;;  %v1398_v50 = vmul.f32 %v5557_v49, %v1390_v27  ;;  %v1464_v49 = vsel %vm1448_vm10, %v1456_v51, %v1440_v30  ;;  %v1443_v30 = vsub.f32 1.0, %v1435_v52 }
 0x284   : > { %v1472_v27 = vadd.f32 1.0, %v1464_v49  ;;  %v1471_v51 = vadd.f32 1.0, %v1463_v6 }
 0x285   : > { %v2581_v23 = vadd.f32 1e-05, %v2573_v53  ;;  %v5634_v53 = vmul.f32 0.5, %v5120_v2  ;;  %v1444_v2 = vsub.f32 1.0, %v1436_v16 }
 0x286   : > { %v2554_v47 = vpop.xlane.xlu1 %2553 }
 0x287   : > { %4603 = vrsqrt.f32 %v2581_v23  ;;  %v2574_v9 = vmul.f32 0.03125, %v2554_v47  ;;  %v4602_v23 = vpop.eup %4601  ;;  %v1460_v44 = vsub.f32 0.0, %v1444_v2 }
 0x288   : > { %v2557_v48 = vpop.xlane.xlu0 %2556  ;;  %v1438_v18 = vmul.f32 %v4602_v23, %v1398_v50  ;;  %v5675_v50 = vld [vmem:[%s6177_s6] ss:$0 sm:$0xff] }
 0x289   : > { %v2582_v58 = vadd.f32 1e-05, %v2574_v9  ;;  %v2575_v33 = vmul.f32 0.03125, %v2557_v48  ;;  %v1459_v48 = vsub.f32 0.0, %v1443_v30 }
 0x28a   : > { %v2560_v21 = vpop.xlane.xlu1 %2559  ;;  %v1446_v16 = vsub.f32 1.0, %v1438_v18 }
 0x28b   : > { %4605 = vrsqrt.f32 %v2582_v58  ;;  %v2576_v35 = vmul.f32 0.03125, %v2560_v21  ;;  %v2583_v3 = vadd.f32 1e-05, %v2575_v33  ;;  %v5655_v58 = vshrl.u32 %v2722_v55, 7 }
 0x28c   : > { %v2563_v9 = vpop.xlane.xlu0 %2562  ;;  %v5658_v21 = vmul.f32 0.5, %v5126_v26  ;;  %v5668_v26 = vmul.f32 %v1472_v27, %v5616_v10  ;;  %v5678_v33 = vmul.f32 %v1471_v51, %v5621_v14  ;;  %v5685_v10 = vld [vmem:[%s6180_s9] sm:$0xff]  ;;  %v1465_v14 = vsel %vm1449_vm14, %v1457_v61, %v1441_v13 }
 0x28d   : > { %v2584_v28 = vadd.f32 1e-05, %v2576_v35  ;;  %v2577_v46 = vmul.f32 0.03125, %v2563_v9  ;;  %v2724_v15 = vsub.s32 0, %v5655_v58  ;;  %v2752_v19 = vsub.s32 1, %v5655_v58  ;;  %v2742_v27 = vld [vmem:[#allocation2 + $0x1] sm:$0xff] }
 0x28e   : > { %v2566_v47 = vpop.xlane.xlu1 %2565  ;;  %6234 = vst [vmem:[#allocation20_spill] sm:$0xff] %v5668_v26  ;;  %6235 = vst [vmem:[#allocation21_spill] sm:$0xff] %v5678_v33  ;;  %v1462_v55 = vsub.f32 0.0, %v1446_v16  ;;  %v1467_v49 = vsel %vm1451_vm15, %v1459_v48, %v1443_v30  ;;  %v5712_v30 = vadd.f32 1.0, %v1465_v14  ;;  %v2828_v56 = vsub.s32 2, %v5655_v58 }
 0x28f   : > { %4607 = vrsqrt.f32 %v2584_v28  ;;  %v2578_v5 = vmul.f32 0.03125, %v2566_v47  ;;  %v2585_v32 = vadd.f32 1e-05, %v2577_v46  ;;  %v5703_v25 = vrot.slane %v5685_v10, %v2724_v15 }
 0x290   : > { %4609 = vrsqrt.f32 %v2583_v3  ;;  %v5706_v9 = vrot.slane %v5685_v10, %v2752_v19  ;;  %6237 = vst [vmem:[#allocation23_spill] sm:$0xff] %v5712_v30  ;;  %v1475_v0 = vadd.f32 1.0, %v1467_v49  ;;  %v1470_v46 = vsel %vm1454_vm1, %v1462_v55, %v1446_v16 }
 0x291   : > { %v2586_v63 = vadd.f32 1e-05, %v2578_v5  ;;  %v2726_v16 = vmul.f32 %v5703_v25, %v2714_v41  ;;  %v2864_v48 = vsub.s32 3, %v5655_v58  ;;  %v2977_v15 = vsub.s32 7, %v5655_v58 }
 0x292   : > { %v2572_v52 = vpop.xlane.xlu1 %2571  ;;  %v2569_v3 = vpop.xlane.xlu0 %2568  ;;  %v2754_v20 = vmul.f32 %v5706_v9, %v2742_v27  ;;  %v5748_v55 = vrot.slane %v5685_v10, %v2828_v56 }
 0x293   : > { %4611 = vrsqrt.f32 %v2586_v63  ;;  %v2580_v23 = vmul.f32 0.03125, %v2572_v52  ;;  %v2579_v47 = vmul.f32 0.03125, %v2569_v3  ;;  %v1477_v63 = vadd.f32 1.0, %v1469_v42 }
 0x294   : > { %v4604_v34 = vpop.eup %4603  ;;  %4613 = vrsqrt.f32 %v2585_v32  ;;  %v2920_v52 = vsub.s32 5, %v5655_v58  ;;  %v2762_v49 = vadd.f32 %v2754_v20, %v2726_v16 }
 0x295   : > { %v2597_v35 = vmul.f32 %v4604_v34, %v5343_v38  ;;  %v1468_v38 = vsel %vm1452_vm13, %v1460_v44, %v1444_v2  ;;  %v2588_v13 = vadd.f32 1e-05, %v2580_v23  ;;  %v2884_v34 = vsub.s32 4, %v5655_v58 }
 0x296   : > { %v1476_v18 = vadd.f32 1.0, %v1468_v38  ;;  %v5739_v19 = vmul.f32 %v1477_v63, %v5658_v21 }
 0x297   : > { %v2612_v54 = vmul.f32 %v5663_v24, %v2597_v35  ;;  %4615 = vrsqrt.f32 %v2588_v13  ;;  %v5730_v35 = vmul.f32 %v1475_v0, %v5638_v59  ;;  %v5745_v14 = vrot.slane %v5685_v10, %v2884_v34 }
 0x298   : > { %v4606_v28 = vpop.eup %4605  ;;  %v5719_v32 = vmul.f32 %v1476_v18, %v5634_v53  ;;  %v5732_v53 = vadd.f32 1.0, %v1470_v46  ;;  %6241 = vst [vmem:[#allocation27_spill] sm:$0xff] %v5739_v19  ;;  %v2974_v18 = vld [vmem:[#allocation2 + $0x49] sm:$0xff] }
 0x299   : > { %v5697_v6 = vadd.f32 %v5675_v50, %v2612_v54  ;;  %v2598_v2 = vmul.f32 %v4606_v28, %v5351_v60  ;;  %v2587_v60 = vadd.f32 1e-05, %v2579_v47  ;;  %6239 = vst [vmem:[#allocation25_spill] sm:$0xff] %v5730_v35  ;;  %v2949_v28 = vsub.s32 6, %v5655_v58 }
 0x29a   : > { %6238 = vst [vmem:[#allocation24_spill] sm:$0xff] %v5719_v32  ;;  %6240 = vst [vmem:[#allocation26_spill] sm:$0xff] %v5732_v53 }
 0x29b   : > { %2640 = vst.msk [vmem:[#allocation2 + $0x9] sm:$0xff] %vm460_vm0, %v5697_v6  ;;  %v2613_v5 = vmul.f32 %v5663_v24, %v2598_v2  ;;  %4617 = vrsqrt.f32 %v2587_v60  ;;  %v5755_v2 = vrot.slane %v5685_v10, %v2864_v48  ;;  %v5775_v0 = vrot.slane %v5685_v10, %v2949_v28 }
 0x29c   : > { %v4608_v36 = vpop.eup %4607  ;;  %v5780_v27 = vmul.f32 %v5745_v14, %v5697_v6 }
 0x29d   : > { %v4610_v12 = vpop.eup %4609  ;;  %v2628_v51 = vadd.f32 %v5675_v50, %v2613_v5  ;;  %v2600_v44 = vmul.f32 %v4608_v36, %v5348_v43 }
 0x29e   : > { %v2599_v61 = vmul.f32 %v4610_v12, %v5360_v22  ;;  %v5736_v22 = vpop.permute.xlu0 %2701 }
 0x29f   : > { %2641 = vst.msk [vmem:[#allocation2 + $0x11] sm:$0xff] %vm460_vm0, %v2628_v51  ;;  %v2615_v43 = vmul.f32 %v5663_v24, %v2600_v44  ;;  %v2887_v6 = vmul.f32 %v5745_v14, %v2628_v51 }
 0x2a0   : > { %v2614_v7 = vmul.f32 %v5663_v24, %v2599_v61  ;;  %v4612_v38 = vpop.eup %4611 }
 0x2a1   : > { %v2630_v54 = vadd.f32 %v5675_v50, %v2615_v43  ;;  %v4614_v59 = vpop.eup %4613  ;;  %v2602_v21 = vmul.f32 %v4612_v38, %v5366_v4  ;;  %v5764_v4 = vrot.slane %v5685_v10, %v2977_v15 }
 0x2a2   : > { %v2667_v62 = vld [vmem:[#allocation2 + $0x8] sm:$0xff]  ;;  %v5751_v3 = vadd.f32 %v5675_v50, %v2614_v7  ;;  %v2601_v47 = vmul.f32 %v4614_v59, %v5370_v29  ;;  %v5766_v41 = vpop.permute.xlu0 %2805  ;;  %v5772_v29 = vrot.slane %v5685_v10, %v2920_v52 }
 0x2a3   : > { %v2770_v23 = vld [vmem:[#allocation2 + $0x2] sm:$0xff]  ;;  %v2715_v58 = vmul.f32 %v5528_v8, %v2667_v62  ;;  %2643 = vst.msk [vmem:[#allocation2 + $0x21] sm:$0xff] %vm460_vm0, %v2630_v54  ;;  %v2617_v13 = vmul.f32 %v5663_v24, %v2602_v21  ;;  %v2854_v60 = vmul.f32 %v5603_v45, %v2667_v62  ;;  %v5784_v34 = vmul.f32 %v5764_v4, %v2974_v18 }
 0x2a4   : > { %6242 = vst [vmem:[#allocation28_spill] sm:$0xff] %v5751_v3  ;;  %v2743_v42 = vld [vmem:[#allocation2 + $0x9] sm:$0xff]  ;;  %2642 = vst.msk [vmem:[#allocation2 + $0x19] sm:$0xff] %vm460_vm0, %v5751_v3  ;;  %v2818_v5 = vmul.f32 %v5538_v37, %v2770_v23  ;;  %v2616_v46 = vmul.f32 %v5663_v24, %v2601_v47  ;;  %v5794_v48 = vmul.f32 %v5745_v14, %v2630_v54  ;;  %v4616_v52 = vpop.eup %4615 }
 0x2a5   : > { %v2727_v36 = vmul.f32 %v5703_v25, %v2715_v58  ;;  %v2632_v44 = vadd.f32 %v5675_v50, %v2617_v13  ;;  %6243 = vst [vmem:[#allocation29_spill] sm:$0xff] %v5784_v34  ;;  %v2755_v61 = vmul.f32 %v5706_v9, %v2743_v42  ;;  %v2866_v15 = vmul.f32 %v5755_v2, %v2854_v60  ;;  %v6245_v42 = vld [vmem:[#allocation4_spill] sm:$0xff] }
 0x2a6   : > { %v2771_v12 = vld [vmem:[#allocation2 + $0xa] sm:$0xff]  ;;  %v2830_v56 = vmul.f32 %v5748_v55, %v2818_v5  ;;  %v2631_v16 = vadd.f32 %v5675_v50, %v2616_v46  ;;  %v5796_v43 = vpop.permute.xlu0 %2711  ;;  %v2604_v23 = vmul.f32 %v4616_v52, %v5379_v31 }
 0x2a7   : > { %v2847_v63 = vld [vmem:[#allocation2 + $0x10] sm:$0xff]  ;;  %v2819_v10 = vmul.f32 %v5544_v40, %v2771_v12  ;;  %2645 = vst.msk [vmem:[#allocation2 + $0x31] sm:$0xff] %vm460_vm0, %v2632_v44  ;;  %v2763_v28 = vadd.f32 %v2755_v61, %v2727_v36  ;;  %v5804_v51 = vmul.f32 %v5745_v14, %v2632_v44  ;;  %v2910_v62 = vmul.f32 %v5538_v37, %v2771_v12 }
 0x2a8   : > { %v2855_v20 = vmul.f32 %v2847_v63, %v5528_v8  ;;  %v2838_v7 = vadd.f32 %v2830_v56, %v2762_v49  ;;  %v5799_v38 = vld [vmem:[#allocation2 + $0x11] sm:$0xff]  ;;  %2644 = vst.msk [vmem:[#allocation2 + $0x29] sm:$0xff] %vm460_vm0, %v2631_v16  ;;  %v4618_v54 = vpop.eup %4617  ;;  %v5812_v58 = vmul.f32 %v5745_v14, %v2631_v16  ;;  %v2939_v47 = vmul.f32 %v2847_v63, %v5603_v45 }
 0x2a9   : > { %v2831_v59 = vmul.f32 %v5748_v55, %v2819_v10  ;;  %v2603_v13 = vmul.f32 %v4618_v54, %v6245_v42  ;;  %v5826_v31 = vmul.f32 %v5764_v4, %v5799_v38  ;;  %v2619_v12 = vmul.f32 %v5663_v24, %v2604_v23  ;;  %v2801_v23 = vpop.permute.xlu1 %2800 }
 0x2aa   : > { %v2867_v21 = vmul.f32 %v5755_v2, %v2855_v20  ;;  %v5809_v49 = vld [vmem:[#allocation2 + $0x21] sm:$0xff]  ;;  %v5822_v46 = vadd.f32 %v2866_v15, %v2838_v7  ;;  %v2995_v15 = vld [vmem:[#allocation2 + $0x4a] sm:$0xff]  ;;  %v5842_v52 = vpop.permute.xlu0 %2815  ;;  %v5857_v30 = vmul.f32 %v5775_v0, %v2939_v47 }
 0x2ab   : > { %6244 = vst [vmem:[#allocation30_spill] sm:$0xff] %v5809_v49  ;;  %v2839_v18 = vadd.f32 %v2831_v59, %v2763_v28  ;;  %v5816_v5 = vld [vmem:[#allocation2 + $0x18] sm:$0xff]  ;;  %v5818_v60 = vld [vmem:[#allocation2 + $0x20] sm:$0xff]  ;;  %v2758_v45 = vmul.f32 %v5706_v9, %v5809_v49  ;;  %v2618_v20 = vmul.f32 %v5663_v24, %v2603_v13  ;;  %v5845_v28 = vadd.f32 %v5675_v50, %v2619_v12 }
 0x2ac   : > { %6246 = vst [vmem:[#allocation4_spill] sm:$0xff] %v5818_v60  ;;  %v5820_v36 = vld [vmem:[#allocation2 + $0x19] sm:$0xff]  ;;  %v2717_v44 = vmul.f32 %v5574_v11, %v5816_v5  ;;  %v2718_v56 = vmul.f32 %v5611_v57, %v5818_v60  ;;  %v5854_v13 = vmul.f32 %v5772_v29, %v2910_v62 }
 0x2ad   : > { %6247 = vst [vmem:[#allocation31_spill] sm:$0xff] %v5820_v36  ;;  %v5835_v61 = vld [vmem:[#allocation2 + $0x1a] sm:$0xff]  ;;  %v2875_v10 = vadd.f32 %v2867_v21, %v2839_v18  ;;  %v2757_v16 = vmul.f32 %v5706_v9, %v5820_v36  ;;  %v2857_v21 = vmul.f32 %v5574_v11, %v5818_v60  ;;  %v2633_v24 = vadd.f32 %v5675_v50, %v2618_v20  ;;  %v6250_v20 = vld [vmem:[#allocation17_spill] sm:$0xff] }
 0x2ae   : > { %v2821_v7 = vmul.f32 %v5600_v17, %v5835_v61  ;;  %v2729_v59 = vmul.f32 %v5703_v25, %v2717_v44  ;;  %v2730_v54 = vmul.f32 %v5703_v25, %v2718_v56  ;;  %v2971_v42 = vld [vmem:[#allocation2 + $0x31] sm:$0xff]  ;;  %2647 = vst.msk [vmem:[#allocation2 + $0x41] sm:$0xff] %vm460_vm0, %v5845_v28  ;;  %v5864_v50 = vmul.f32 %v2995_v15, %v5842_v52 }
 0x2af   : > { %v5861_v56 = vld [vmem:[#allocation2 + $0x22] sm:$0xff]  ;;  %v2906_v39 = vld [vmem:[#allocation2 + $0x2a] sm:$0xff]  ;;  %2646 = vst.msk [vmem:[#allocation2 + $0x39] sm:$0xff] %vm460_vm0, %v2633_v24  ;;  %v2869_v15 = vmul.f32 %v5755_v2, %v2857_v21  ;;  %v2760_v1 = vmul.f32 %v2971_v42, %v5706_v9 }
 0x2b0   : > { %v2833_v18 = vmul.f32 %v5748_v55, %v2821_v7  ;;  %v2765_v12 = vadd.f32 %v2757_v16, %v2729_v59  ;;  %v2766_v44 = vadd.f32 %v2758_v45, %v2730_v54  ;;  %6248 = vst [vmem:[#allocation32_spill] sm:$0xff] %v5861_v56  ;;  %v2850_v53 = vld [vmem:[#allocation2 + $0x28] sm:$0xff]  ;;  %6249 = vst [vmem:[#allocation33_spill] sm:$0xff] %v5864_v50  ;;  %v2851_v35 = vld [vmem:[#allocation2 + $0x30] sm:$0xff]  ;;  %v2707_v50 = vpop.permute.xlu1 %2706 }
 0x2b1   : > { %v5867_v7 = vmul.f32 %v2847_v63, %v6250_v20  ;;  %v2822_v62 = vmul.f32 %v2801_v23, %v5861_v56  ;;  %v2858_v47 = vmul.f32 %v2850_v53, %v5611_v57  ;;  %v2913_v16 = vmul.f32 %v5600_v17, %v5861_v56  ;;  %v2970_v59 = vld [vmem:[#allocation2 + $0x29] sm:$0xff] }
 0x2b2   : > { %v2914_v45 = vmul.f32 %v2906_v39, %v2801_v23  ;;  %v5874_v54 = vadd.f32 %v2887_v6, %v2875_v10  ;;  %v2841_v19 = vadd.f32 %v2833_v18, %v2765_v12  ;;  %v5878_v63 = vmul.f32 %v5764_v4, %v2971_v42 }
 0x2b3   : > { %v2834_v49 = vmul.f32 %v5748_v55, %v2822_v62  ;;  %v2942_v32 = vmul.f32 %v2850_v53, %v5574_v11  ;;  %v2982_v26 = vmul.f32 %v5764_v4, %v2970_v59  ;;  %v2870_v56 = vmul.f32 %v5755_v2, %v2858_v47 }
 0x2b4   : > { %v2877_v33 = vadd.f32 %v2869_v15, %v2841_v19  ;;  %v2925_v6 = vmul.f32 %v5772_v29, %v2913_v16  ;;  %v2999_v10 = vmul.f32 %v2906_v39, %v5600_v17  ;;  %v2926_v18 = vmul.f32 %v5772_v29, %v2914_v45  ;;  %v5896_v19 = vld [vmem:[%s6180_s9 + $0x8] ss:$0 sm:$0xff] }
 0x2b5   : > { %v2842_v21 = vadd.f32 %v2834_v49, %v2766_v44  ;;  %v2943_v12 = vmul.f32 %v2851_v35, %v5611_v57  ;;  %v2719_v62 = vmul.f32 %v2850_v53, %v5736_v22  ;;  %v2859_v34 = vmul.f32 %v2851_v35, %v5736_v22  ;;  %v2973_v45 = vld [vmem:[#allocation2 + $0x41] sm:$0xff] }
 0x2b6   : > { %v2897_v11 = vadd.f32 %v5794_v48, %v2877_v33  ;;  %v2720_v42 = vmul.f32 %v2851_v35, %v2707_v50  ;;  %v2823_v47 = vmul.f32 %v2906_v39, %v5766_v41  ;;  %v2954_v49 = vmul.f32 %v5775_v0, %v2942_v32  ;;  %v2907_v44 = vld [vmem:[#allocation2 + $0x32] sm:$0xff]  ;;  %v2853_v32 = vld [vmem:[#allocation2 + $0x40] sm:$0xff] }
 0x2b7   : > { %v2878_v17 = vadd.f32 %v2870_v56, %v2842_v21  ;;  %v2759_v57 = vmul.f32 %v2970_v59, %v5706_v9  ;;  %v2731_v53 = vmul.f32 %v5703_v25, %v2719_v62  ;;  %v3011_v33 = vmul.f32 %v5896_v19, %v2999_v10  ;;  %v2852_v48 = vld [vmem:[#allocation2 + $0x38] sm:$0xff] }
 0x2b8   : > { %v2933_v16 = vadd.f32 %v2925_v6, %v2897_v11  ;;  %v2732_v35 = vmul.f32 %v5703_v25, %v2720_v42  ;;  %v2835_v39 = vmul.f32 %v5748_v55, %v2823_v47  ;;  %v2955_v56 = vmul.f32 %v5775_v0, %v2943_v12  ;;  %v2908_v11 = vld [vmem:[#allocation2 + $0x3a] sm:$0xff] }
 0x2b9   : > { %v2898_v15 = vadd.f32 %v5812_v58, %v2878_v17  ;;  %v2767_v21 = vadd.f32 %v2759_v57, %v2731_v53  ;;  %v2892_v59 = vmul.f32 %v5745_v14, %v2633_v24  ;;  %v3000_v62 = vmul.f32 %v2907_v44, %v2801_v23  ;;  %v2811_v53 = vpop.permute.xlu1 %2810  ;;  %v2909_v23 = vld [vmem:[#allocation2 + $0x42] sm:$0xff]  ;;  %v2972_v36 = vld [vmem:[#allocation2 + $0x39] sm:$0xff] }
 0x2ba   : > { %v2962_v60 = vadd.f32 %v2954_v49, %v2933_v16  ;;  %v2871_v6 = vmul.f32 %v5755_v2, %v2859_v34  ;;  %v2944_v10 = vmul.f32 %v2852_v48, %v5736_v22  ;;  %v2860_v42 = vmul.f32 %v2852_v48, %v2707_v50 }
 0x2bb   : > { %v2934_v3 = vadd.f32 %v2926_v18, %v2898_v15  ;;  %v2843_v20 = vadd.f32 %v2835_v39, %v2767_v21  ;;  %v5910_v47 = vmul.f32 %v5764_v4, %v2973_v45  ;;  %v2768_v17 = vadd.f32 %v2760_v1, %v2732_v35 }
 0x2bc   : > { %v2990_v58 = vadd.f32 %v2982_v26, %v2962_v60  ;;  %v2945_v12 = vmul.f32 %v2853_v32, %v2707_v50  ;;  %v2915_v57 = vmul.f32 %v2907_v44, %v5766_v41  ;;  %v2824_v16 = vmul.f32 %v2907_v44, %v2811_v53 }
 0x2bd   : > { %v2963_v24 = vadd.f32 %v2955_v56, %v2934_v3  ;;  %v2879_v49 = vadd.f32 %v2871_v6, %v2843_v20  ;;  %v2916_v34 = vmul.f32 %v2908_v11, %v2811_v53  ;;  %v3012_v22 = vmul.f32 %v5896_v19, %v3000_v62 }
 0x2be   : > { %v3019_v18 = vadd.f32 %v3011_v33, %v2990_v58  ;;  %v2956_v39 = vmul.f32 %v5775_v0, %v2944_v10  ;;  %v3001_v45 = vmul.f32 %v2908_v11, %v5766_v41  ;;  %v2872_v26 = vmul.f32 %v5755_v2, %v2860_v42  ;;  %v2938_v33 = vld [vmem:[#allocation2 + $0x48] sm:$0xff]  ;;  %v5926_v41 = vld [vmem:[%s6181_s10] ss:$0 sm:$0xff] }
 0x2bf   : > { %v2899_v1 = vadd.f32 %v5804_v51, %v2879_v49  ;;  %v2927_v60 = vmul.f32 %v5772_v29, %v2915_v57  ;;  %v2836_v3 = vmul.f32 %v5748_v55, %v2824_v16  ;;  %v2991_v50 = vadd.f32 %v5878_v63, %v2963_v24  ;;  %v2903_v57 = vld [vmem:[#allocation2 + $0x12] sm:$0xff] }
 0x2c0   : > { %v2957_v20 = vmul.f32 %v5775_v0, %v2945_v12  ;;  %v2984_v44 = vmul.f32 %v5764_v4, %v2972_v36  ;;  %v3002_v35 = vmul.f32 %v2909_v23, %v2811_v53  ;;  %v2928_v51 = vmul.f32 %v5772_v29, %v2916_v34 }
 0x2c1   : > { %v2935_v15 = vadd.f32 %v2927_v60, %v2899_v1  ;;  %v2844_v56 = vadd.f32 %v2836_v3, %v2768_v17  ;;  %v2721_v21 = vmul.f32 %v2852_v48, %v5796_v43  ;;  %v5931_v62 = vadd.f32 %v5926_v41, %v3019_v18 }
 0x2c2   : > { %v3013_v63 = vmul.f32 %v5896_v19, %v3001_v45  ;;  %v2761_v6 = vmul.f32 %v2972_v36, %v5706_v9  ;;  %v2861_v10 = vmul.f32 %v2853_v32, %v5796_v43  ;;  %v2946_v12 = vmul.f32 %v2938_v33, %v5796_v43 }
 0x2c3   : > { %v2880_v42 = vadd.f32 %v2872_v26, %v2844_v56  ;;  %v2733_v58 = vmul.f32 %v5703_v25, %v2721_v21  ;;  %v2825_v17 = vmul.f32 %v2908_v11, %v5842_v52  ;;  %v5939_v53 = vadd.f32 %v3012_v22, %v2991_v50  ;;  %v6253_v21 = vld [vmem:[#allocation17_spill] sm:$0xff] }
 0x2c4   : > { %v2964_v48 = vadd.f32 %v2956_v39, %v2935_v15  ;;  %v3014_v24 = vmul.f32 %v5896_v19, %v3002_v35  ;;  %v2917_v49 = vmul.f32 %v2909_v23, %v5842_v52  ;;  %v2893_v36 = vmul.f32 %v5745_v14, %v5845_v28 }
 0x2c5   : > { %v2900_v16 = vadd.f32 %v2892_v59, %v2880_v42  ;;  %v2769_v34 = vadd.f32 %v2761_v6, %v2733_v58  ;;  %v2837_v32 = vmul.f32 %v5748_v55, %v2825_v17  ;;  %v2873_v18 = vmul.f32 %v5755_v2, %v2861_v10 }
 0x2c6   : > { %v2894_v43 = vadd.f32 %v5780_v27, %v5822_v46  ;;  %v2911_v11 = vmul.f32 %v2903_v57, %v5544_v40  ;;  %v2996_v22 = vmul.f32 %v2903_v57, %v5538_v37  ;;  %v2958_v45 = vmul.f32 %v5775_v0, %v2946_v12 }
 0x2c7   : > { %v2936_v39 = vadd.f32 %v2928_v51, %v2900_v16  ;;  %v2845_v52 = vadd.f32 %v2837_v32, %v2769_v34  ;;  %v2940_v59 = vmul.f32 %v5528_v8, %v5816_v5  ;;  %v2992_v23 = vadd.f32 %v2984_v44, %v2964_v48  ;;  %v6256_v16 = vld [vmem:[#allocation29_spill] sm:$0xff] }
 0x2c8   : > { %v2929_v28 = vmul.f32 %v5772_v29, %v2917_v49  ;;  %v2923_v26 = vmul.f32 %v5772_v29, %v2911_v11  ;;  %v2930_v1 = vadd.f32 %v5854_v13, %v2894_v43  ;;  %v3008_v46 = vmul.f32 %v5896_v19, %v2996_v22  ;;  %v6255_v49 = vld [vmem:[#allocation4_spill] sm:$0xff]  ;;  %v6259_v11 = vld [vmem:[#allocation22_spill] sm:$0xff] }
 0x2c9   : > { %v2965_v60 = vadd.f32 %v2957_v20, %v2936_v39  ;;  %v2881_v27 = vadd.f32 %v2873_v18, %v2845_v52  ;;  %v2952_v37 = vmul.f32 %v5775_v0, %v2940_v59  ;;  %v2997_v8 = vmul.f32 %v5544_v40, %v5835_v61  ;;  %v6251_v20 = vld [vmem:[#allocation18_spill] sm:$0xff] }
 0x2ca   : > { %v2931_v3 = vadd.f32 %v2923_v26, %v5874_v54  ;;  %v2959_v50 = vadd.f32 %v5857_v30, %v2930_v1  ;;  %v2728_v44 = vmul.f32 %v5703_v25, %v5867_v7  ;;  %v2756_v13 = vmul.f32 %v5799_v38, %v5706_v9  ;;  %v6252_v54 = vld [vmem:[#allocation31_spill] sm:$0xff] }
 0x2cb   : > { %v2993_v35 = vadd.f32 %v5910_v47, %v2965_v60  ;;  %v2901_v33 = vadd.f32 %v2893_v36, %v2881_v27  ;;  %v2820_v15 = vmul.f32 %v2903_v57, %v6251_v20  ;;  %v2980_v30 = vmul.f32 %v5764_v4, %v6252_v54  ;;  %v6254_v57 = vld [vmem:[#allocation28_spill] sm:$0xff]  ;;  %v6257_v36 = vld [vmem:[#allocation33_spill] sm:$0xff]  ;;  %v6267_v54 = vld [vmem:[#allocation26_spill] sm:$0xff] }
 0x2cc   : > { %v2987_v56 = vadd.f32 %v5826_v31, %v2959_v50  ;;  %v2960_v51 = vadd.f32 %v2952_v37, %v2931_v3  ;;  %v2856_v40 = vmul.f32 %v6253_v21, %v5816_v5  ;;  %v3021_v6 = vadd.f32 %v3013_v63, %v2992_v23  ;;  %v6261_v60 = vld [vmem:[#allocation32_spill] sm:$0xff] }
 0x2cd   : > { %v2937_v10 = vadd.f32 %v2929_v28, %v2901_v33  ;;  %v2764_v25 = vadd.f32 %v2756_v13, %v2728_v44  ;;  %v2832_v7 = vmul.f32 %v5748_v55, %v2820_v15  ;;  %v3022_v47 = vadd.f32 %v3014_v24, %v2993_v35  ;;  %v6260_v28 = vld [vmem:[#allocation20_spill] sm:$0xff]  ;;  %v6264_v35 = vld [vmem:[#allocation25_spill] sm:$0xff] }
 0x2ce   : > { %v3016_v42 = vadd.f32 %v3008_v46, %v2987_v56  ;;  %v2988_v58 = vadd.f32 %v2980_v30, %v2960_v51  ;;  %v3009_v9 = vmul.f32 %v5896_v19, %v2997_v8  ;;  %v2868_v31 = vmul.f32 %v5755_v2, %v2856_v40  ;;  %v6262_v3 = vld [vmem:[#allocation24_spill] sm:$0xff]  ;;  %v6263_v8 = vld [vmem:[#allocation30_spill] sm:$0xff]  ;;  %v6266_v51 = vld [vmem:[#allocation19_spill] sm:$0xff] }
 0x2cf   : > { %v2966_v38 = vadd.f32 %v2958_v45, %v2937_v10  ;;  %v2840_v12 = vadd.f32 %v2832_v7, %v2764_v25  ;;  %v2912_v17 = vmul.f32 %v6251_v20, %v5835_v61  ;;  %v2888_v5 = vmul.f32 %v5745_v14, %v6254_v57  ;;  %v6258_v61 = vld [vmem:[#allocation21_spill] sm:$0xff]  ;;  %v6270_v57 = vld [vmem:[#allocation7_spill] sm:$0xff] }
 0x2d0   : > { %v3031_v63 = vadd.f32 %v5926_v41, %v3016_v42  ;;  %v3017_v48 = vadd.f32 %v3009_v9, %v2988_v58  ;;  %v2941_v55 = vmul.f32 %v6253_v21, %v6255_v49  ;;  %v3036_v24 = vadd.f32 %v5926_v41, %v3021_v6 }
 0x2d1   : > { %v2994_v34 = vadd.f32 %v6256_v16, %v2966_v38  ;;  %v3015_v32 = vmul.f32 %v5896_v19, %v6257_v36  ;;  %v2876_v2 = vadd.f32 %v2868_v31, %v2840_v12  ;;  %v3037_v18 = vadd.f32 %v5926_v41, %v3022_v47  ;;  %v6268_v47 = vld [vmem:[#allocation3_spill] sm:$0xff] }
 0x2d2   : > { %v3039_v43 = vmul.f32 %v3031_v63, %v6258_v61  ;;  %v3032_v14 = vadd.f32 %v5926_v41, %v3017_v48  ;;  %v3042_v22 = vmul.f32 %v5931_v62, %v6259_v11  ;;  %v2924_v52 = vmul.f32 %v5772_v29, %v2912_v17  ;;  %v6273_v61 = vld [vmem:[#allocation13_spill] sm:$0xff] }
 0x2d3   : > { %v3023_v39 = vadd.f32 %v3015_v32, %v2994_v34  ;;  %v2896_v45 = vadd.f32 %v2888_v5, %v2876_v2  ;;  %v3035_v59 = vadd.f32 %v5926_v41, %v5939_v53  ;;  %v2953_v1 = vmul.f32 %v5775_v0, %v2941_v55  ;;  %v6265_v0 = vld [vmem:[#allocation27_spill] sm:$0xff]  ;;  %v6272_v34 = vld [vmem:[#allocation10_spill] sm:$0xff] }
 0x2d4   : > { %v3059_v23 = vsel %vm460_vm0, %v3039_v43, 0  ;;  %v3040_v26 = vmul.f32 %v3032_v14, %v6260_v28  ;;  %v2998_v27 = vmul.f32 %v6251_v20, %v6261_v60  ;;  %v3068_v62 = vsel %vm460_vm0, %v3042_v22, 0  ;;  %v6271_v5 = vld [vmem:[#allocation23_spill] sm:$0xff] }
 0x2d5   : > { %v6001_v46 = vand.u32 4294901760, %v3059_v23  ;;  %v2932_v37 = vadd.f32 %v2924_v52, %v2896_v45  ;;  %v3044_v50 = vmul.f32 %v3036_v24, %v6262_v3  ;;  %v3038_v29 = vadd.f32 %v5926_v41, %v3023_v39  ;;  %v6274_v45 = vld [vmem:[#allocation6_spill] sm:$0xff] }
 0x2d6   : > { %v3062_v53 = vsel %vm460_vm0, %v3040_v26, 0  ;;  %v2981_v44 = vmul.f32 %v5764_v4, %v6263_v8  ;;  %v3043_v33 = vmul.f32 %v3035_v59, %v6264_v35  ;;  %v3045_v13 = vmul.f32 %v3037_v18, %v6265_v0  ;;  %v6278_v35 = vld [vmem:[#allocation8_spill] sm:$0xff] }
 0x2d7   : > { %4435 = vmatprep.mubr.f32.mxu1 %v6001_v46  ;;  %v6012_v20 = vand.u32 4294901760, %v3062_v53  ;;  %v2961_v15 = vadd.f32 %v2953_v1, %v2932_v37  ;;  %v6015_v56 = vsub.f32 %v3059_v23, %v6001_v46  ;;  %v1486_v30 = vmul.f32 %v6267_v54, %v6266_v51  ;;  %v6275_v23 = vld [vmem:[#allocation9_spill] sm:$0xff]  ;;  %v6276_v1 = vld [vmem:[#allocation12_spill] sm:$0xff] }
 0x2d8   : > { %v3010_v21 = vmul.f32 %v5896_v19, %v2998_v27  ;;  %v6020_v40 = vand.u32 4294901760, %v3068_v62  ;;  %v3071_v4 = vsel %vm460_vm0, %v3043_v33, 0  ;;  %v3074_v7 = vsel %vm460_vm0, %v3044_v50, 0  ;;  %v6269_v19 = vld [vmem:[#allocation5_spill] sm:$0xff]  ;;  %v6277_v50 = vld [vmem:[#allocation15_spill] sm:$0xff] }
 0x2d9   : > { %v6024_v6 = vsub.f32 %v3062_v53, %v6012_v20  ;;  %4436 = vmatmul.mubr.f32.vlgmr.msra.gmra.mxu1 %v6012_v20  ;;  %v2989_v10 = vadd.f32 %v2981_v44, %v2961_v15  ;;  %v3153_v25 = vand.u32 4294901760, %v6015_v56  ;;  %v1273_v42 = vmul.f32 0.5, %v6268_v47 }
 0x2da   : > { %v3046_v58 = vmul.f32 %v3038_v29, %v1486_v30  ;;  %v6030_v9 = vand.u32 4294901760, %v3071_v4  ;;  %4468 = vmatpush3.msra.mxu1 %v6269_v19  ;;  %v3077_v17 = vsel %vm460_vm0, %v3045_v13, 0  ;;  %v6040_v48 = vand.u32 4294901760, %v3074_v7 }
 0x2db   : > { %v3018_v38 = vadd.f32 %v3010_v21, %v2989_v10  ;;  %v3154_v12 = vsub.f32 %v6015_v56, %v3153_v25  ;;  %v3163_v31 = vand.u32 4294901760, %v6024_v6  ;;  %4469 = vmatprep.subr.mxu1 %v6270_v57  ;;  %v1481_v63 = vmul.f32 %v6271_v5, %v1273_v42  ;;  %v6279_v21 = vld [vmem:[#allocation11_spill] sm:$0xff] }
 0x2dc   : > { %4470 = vmatpush3.msra.mxu1 %v6270_v57  ;;  %v6048_v16 = vsub.f32 %v3068_v62, %v6020_v40  ;;  %v6051_v36 = vand.u32 4294901760, %v3077_v17  ;;  %v3080_v32 = vsel %vm460_vm0, %v3046_v58, 0  ;;  %v6056_v2 = vsub.f32 %v3071_v4, %v6030_v9  ;;  %v6281_v4 = vld [vmem:[#allocation16_spill] sm:$0xff] }
 0x2dd   : > { %v3033_v49 = vadd.f32 %v5926_v41, %v3018_v38  ;;  %v3155_v55 = vand.u32 4294901760, %v3154_v12  ;;  %v3164_v24 = vsub.f32 %v6024_v6, %v3163_v31  ;;  %4471 = vmatprep.subr.mxu1 %v6272_v34  ;;  %v6062_v11 = vand.u32 4294901760, %v3080_v32 }
 0x2de   : > { %4472 = vmatpush3.msra.mxu1 %v6272_v34  ;;  %v3183_v14 = vand.u32 4294901760, %v6048_v16  ;;  %v6065_v22 = vsub.f32 %v3074_v7, %v6040_v48  ;;  %v3193_v52 = vand.u32 4294901760, %v6056_v2  ;;  %v6073_v59 = vsub.f32 %v3077_v17, %v6051_v36 }
 0x2df   : > { %v3041_v41 = vmul.f32 %v3033_v49, %v1481_v63  ;;  %4415 = vmatprep.mubr.f32.mxu0 %v3155_v55  ;;  %v3165_v18 = vand.u32 4294901760, %v3164_v24  ;;  %4473 = vmatprep.subr.mxu1 %v6273_v61  ;;  %v3222_v27 = vsub.f32 %v3080_v32, %v6062_v11  ;;  %v3946_v24 = vld [vmem:[%s6183_s12] ss:$0 sm:$0xff] }
 0x2e0   : > { %4474 = vmatpush3.msra.mxu1 %v6273_v61  ;;  %v3184_v26 = vsub.f32 %v6048_v16, %v3183_v14  ;;  %v3203_v60 = vand.u32 4294901760, %v6065_v22  ;;  %v3194_v62 = vsub.f32 %v6056_v2, %v3193_v52  ;;  %v3213_v3 = vand.u32 4294901760, %v6073_v59 }
 0x2e1   : > { %v3065_v43 = vsel %vm460_vm0, %v3041_v41, 0  ;;  %4416 = vmatmul.mubr.f32.vlgmr.msra.gmra.mxu0 %v3165_v18  ;;  %4507 = vmatprep.subr.mxu1 %v6269_v19  ;;  %v3223_v44 = vand.u32 4294901760, %v3222_v27 }
 0x2e2   : > { %v6068_v39 = vand.u32 4294901760, %v3065_v43  ;;  %4448 = vmatpush3.msra.mxu0 %v6274_v45  ;;  %v3185_v53 = vand.u32 4294901760, %v3184_v26  ;;  %v3204_v8 = vsub.f32 %v6065_v22, %v3203_v60  ;;  %v3195_v0 = vand.u32 4294901760, %v3194_v62 }
 0x2e3   : > { %4449 = vmatprep.subr.mxu0 %v6275_v23  ;;  %v3214_v13 = vsub.f32 %v6073_v59, %v3213_v3  ;;  %v3224_v51 = vsub.f32 %v3222_v27, %v3223_v44 }
 0x2e4   : > { %4438 = vmatprep.mubr.f32.mxu1 %v6068_v39  ;;  %v3172_v28 = vsub.f32 %v3065_v43, %v6068_v39  ;;  %4450 = vmatpush3.msra.mxu0 %v6275_v23  ;;  %v3205_v15 = vand.u32 4294901760, %v3204_v8 }
 0x2e5   : > { %4439 = vmatmul.mubr.f32.gmra.mxu1 %v6020_v40  ;;  %4451 = vmatprep.subr.mxu0 %v6276_v1  ;;  %v3215_v54 = vand.u32 4294901760, %v3214_v13  ;;  %v3225_v30 = vand.u32 4294901760, %v3224_v51 }
 0x2e6   : > { %4441 = vmatprep.mubr.f32.mxu1 %v6030_v9  ;;  %v3173_v37 = vand.u32 4294901760, %v3172_v28  ;;  %4452 = vmatpush3.msra.mxu0 %v6276_v1 }
 0x2e7   : > { %4453 = vmatprep.subr.mxu0 %v6277_v50 }
 0x2e8   : > { %v3174_v29 = vsub.f32 %v3172_v28, %v3173_v37  ;;  %4454 = vmatpush3.msra.mxu0 %v6277_v50 }
 0x2e9   : > { %4442 = vmatmul.mubr.f32.gmra.mxu1 %v6040_v48  ;;  %4487 = vmatprep.subr.mxu0 %v6278_v35 }
 0x2ea   : > { %v3175_v33 = vand.u32 4294901760, %v3174_v29  ;;  %4444 = vmatprep.mubr.f32.mxu1 %v6051_v36 }
 0x2ec   : > { %4418 = vmatprep.mubr.f32.mxu0 %v3175_v33 }
 0x2ed   : > { %4419 = vmatmul.mubr.f32.gmra.mxu0 %v3185_v53  ;;  %4445 = vmatmul.mubr.f32.gmra.mxu1 %v6062_v11 }
 0x2ee   : > { %4475 = vmatprep.mubr.f32.mxu1 %v3153_v25  ;;  %4421 = vmatprep.mubr.f32.mxu0 %v3195_v0 }
 0x2f1   : > { %4422 = vmatmul.mubr.f32.gmra.mxu0 %v3205_v15  ;;  %4476 = vmatmul.mubr.f32.vlgmr.msra.gmra.mxu1 %v3163_v31 }
 0x2f2   : > { %4478 = vmatprep.mubr.f32.mxu1 %v3173_v37  ;;  %4424 = vmatprep.mubr.f32.mxu0 %v3215_v54 }
 0x2f3   : > { %4508 = vmatpush3.msra.mxu1 %v6269_v19 }
 0x2f4   : > { %4509 = vmatprep.subr.mxu1 %v6270_v57 }
 0x2f5   : > { %4425 = vmatmul.mubr.f32.gmra.mxu0 %v3225_v30  ;;  %4479 = vmatmul.mubr.f32.gmra.mxu1 %v3183_v14 }
 0x2f6   : > { %4455 = vmatprep.mubr.f32.mxu0 %v6015_v56  ;;  %4481 = vmatprep.mubr.f32.mxu1 %v3193_v52  ;;  %v6280_v56 = vld [vmem:[#allocation14_spill] sm:$0xff] }
 0x2f7   : > { %4510 = vmatpush3.msra.mxu1 %v6270_v57 }
 0x2f8   : > { %4511 = vmatprep.subr.mxu1 %v6272_v34 }
 0x2f9   : > { %4456 = vmatmul.mubr.f32.vlgmr.msra.gmra.mxu0 %v6024_v6  ;;  %4482 = vmatmul.mubr.f32.gmra.mxu1 %v3203_v60 }
 0x2fa   : > { %4488 = vmatpush3.msra.mxu0 %v6278_v35  ;;  %4458 = vmatprep.mubr.f32.mxu0 %v3172_v28 }
 0x2fb   : > { %4484 = vmatprep.mubr.f32.mxu1 %v3213_v3  ;;  %4489 = vmatprep.subr.mxu0 %v6279_v21 }
 0x2fc   : > { %4490 = vmatpush3.msra.mxu0 %v6279_v21  ;;  %4512 = vmatpush3.msra.mxu1 %v6272_v34 }
 0x2fd   : > { %4459 = vmatmul.mubr.f32.gmra.mxu0 %v6048_v16  ;;  %4485 = vmatmul.mubr.f32.gmra.mxu1 %v3223_v44 }
 0x2fe   : > { %4461 = vmatprep.mubr.f32.mxu0 %v6056_v2  ;;  %4515 = vmatprep.mubr.f32.mxu1 %v6001_v46 }
 0x2ff   : > { %4513 = vmatprep.subr.mxu1 %v6273_v61  ;;  %4491 = vmatprep.subr.mxu0 %v6280_v56 }
 0x300   : > { %4514 = vmatpush3.msra.mxu1 %v6273_v61  ;;  %4492 = vmatpush3.msra.mxu0 %v6280_v56 }
 0x301   : > { %4462 = vmatmul.mubr.f32.gmra.mxu0 %v6065_v22  ;;  %4516 = vmatmul.mubr.f32.vlgmr.msra.gmra.mxu1 %v6012_v20 }
 0x302   : > { %4464 = vmatprep.mubr.f32.mxu0 %v6073_v59  ;;  %4518 = vmatprep.mubr.f32.mxu1 %v6068_v39 }
 0x303   : > { %4493 = vmatprep.subr.mxu0 %v6281_v4 }
 0x304   : > { %4494 = vmatpush3.msra.mxu0 %v6281_v4 }
 0x305   : > { %4465 = vmatmul.mubr.f32.gmra.mxu0 %v3222_v27  ;;  %4519 = vmatmul.mubr.f32.gmra.mxu1 %v6020_v40 }
 0x306   : > { %4495 = vmatprep.mubr.f32.mxu0 %v6001_v46  ;;  %4521 = vmatprep.mubr.f32.mxu1 %v6030_v9 }
 0x309   : > { %4496 = vmatmul.mubr.f32.vlgmr.msra.gmra.mxu0 %v6012_v20  ;;  %4522 = vmatmul.mubr.f32.gmra.mxu1 %v6040_v48 }
 0x30a   : > { %4498 = vmatprep.mubr.f32.mxu0 %v6068_v39  ;;  %4524 = vmatprep.mubr.f32.mxu1 %v6051_v36 }
 0x30d   : > { %4499 = vmatmul.mubr.f32.gmra.mxu0 %v6020_v40  ;;  %4525 = vmatmul.mubr.f32.gmra.mxu1 %v6062_v11 }
 0x30e   : > { %4501 = vmatprep.mubr.f32.mxu0 %v6030_v9 }
 0x311   : > { %4502 = vmatmul.mubr.f32.gmra.mxu0 %v6040_v48 }
 0x312   : > { %4504 = vmatprep.mubr.f32.mxu0 %v6051_v36 }
 0x315   : > { %4505 = vmatmul.mubr.f32.gmra.mxu0 %v6062_v11 }
 0x399   : > { %v4437_v46 = vpop.f32.mrf.mxu1 }
 0x39b   : > { %v3318_v20 = vpop.f32.mrf.mxu1 }
 0x3a1   : > { %v4417_v10 = vpop.f32.mrf.mxu0 }
 0x3a2   : > { %v3168_v2 = vadd.f32 %v4417_v10, %v3946_v24 }
 0x3a3   : > { %v3157_v47 = vpop.f32.mrf.mxu0 }
 0x3a4   : > { %v3158_v61 = vadd.f32 %v3946_v24, %v3157_v47  ;;  %v3325_v22 = vadd.f32 %v4437_v46, %v3168_v2 }
 0x3a5   : > { %v4440_v6 = vpop.f32.mrf.mxu1 }
 0x3a6   : > { %v3319_v23 = vadd.f32 %v3318_v20, %v3158_v61 }
 0x3a7   : > { %v3330_v25 = vpop.f32.mrf.mxu1 }
 0x3a9   : > { %v4443_v7 = vpop.f32.mrf.mxu1 }
 0x3ab   : > { %v3342_v42 = vpop.f32.mrf.mxu1 }
 0x3ad   : > { %v4420_v58 = vpop.f32.mrf.mxu0  ;;  %v4446_v40 = vpop.f32.mrf.mxu1 }
 0x3ae   : > { %v3188_v11 = vadd.f32 %v4420_v58, %v3946_v24 }
 0x3af   : > { %v3177_v19 = vpop.f32.mrf.mxu0  ;;  %v3354_v38 = vpop.f32.mrf.mxu1 }
 0x3b0   : > { %v3178_v52 = vadd.f32 %v3946_v24, %v3177_v19  ;;  %v3337_v27 = vadd.f32 %v4440_v6, %v3188_v11 }
 0x3b1   : > { %v4423_v12 = vpop.f32.mrf.mxu0  ;;  %v4477_v9 = vpop.f32.mrf.mxu1 }
 0x3b2   : > { %v3208_v1 = vadd.f32 %v4423_v12, %v3946_v24  ;;  %v3331_v50 = vadd.f32 %v3330_v25, %v3178_v52 }
 0x3b3   : > { %v3197_v31 = vpop.f32.mrf.mxu0  ;;  %v3566_v17 = vpop.f32.mrf.mxu1 }
 0x3b4   : > { %v3198_v37 = vadd.f32 %v3946_v24, %v3197_v31  ;;  %v3349_v33 = vadd.f32 %v4443_v7, %v3208_v1 }
 0x3b5   : > { %v4426_v57 = vpop.f32.mrf.mxu0  ;;  %v4480_v5 = vpop.f32.mrf.mxu1 }
 0x3b6   : > { %v3228_v53 = vadd.f32 %v4426_v57, %v3946_v24  ;;  %v3343_v51 = vadd.f32 %v3342_v42, %v3198_v37 }
 0x3b7   : > { %v3217_v63 = vpop.f32.mrf.mxu0  ;;  %v3582_v48 = vpop.f32.mrf.mxu1 }
 0x3b8   : > { %v3218_v15 = vadd.f32 %v3946_v24, %v3217_v63  ;;  %v3361_v46 = vadd.f32 %v4446_v40, %v3228_v53 }
 0x3b9   : > { %v4457_v49 = vpop.f32.mrf.mxu0  ;;  %v4483_v55 = vpop.f32.mrf.mxu1 }
 0x3ba   : > { %v3448_v59 = vadd.f32 %v4457_v49, %v3325_v22  ;;  %v3355_v42 = vadd.f32 %v3354_v38, %v3218_v15 }
 0x3bb   : > { %v3440_v16 = vpop.f32.mrf.mxu0  ;;  %v3598_v34 = vpop.f32.mrf.mxu1 }
 0x3bc   : > { %v3441_v60 = vadd.f32 %v3440_v16, %v3319_v23  ;;  %v3575_v29 = vadd.f32 %v4477_v9, %v3448_v59 }
 0x3bd   : > { %v4460_v36 = vpop.f32.mrf.mxu0  ;;  %v6139_v32 = vpop.f32.mrf.mxu1 }
 0x3be   : > { %v3462_v3 = vadd.f32 %v4460_v36, %v3337_v27  ;;  %v3567_v13 = vadd.f32 %v3566_v17, %v3441_v60 }
 0x3bf   : > { %v3454_v41 = vpop.f32.mrf.mxu0  ;;  %v6141_v18 = vpop.f32.mrf.mxu1 }
 0x3c0   : > { %v3455_v35 = vadd.f32 %v3454_v41, %v3331_v50  ;;  %v3591_v4 = vadd.f32 %v4480_v5, %v3462_v3 }
 0x3c1   : > { %v4463_v43 = vpop.f32.mrf.mxu0  ;;  %v4517_v14 = vpop.f32.mrf.mxu1 }
 0x3c2   : > { %v3476_v30 = vadd.f32 %v4463_v43, %v3349_v33  ;;  %v3583_v47 = vadd.f32 %v3582_v48, %v3455_v35 }
 0x3c3   : > { %v3468_v39 = vpop.f32.mrf.mxu0  ;;  %v3822_v45 = vpop.f32.mrf.mxu1 }
 0x3c4   : > { %v3469_v10 = vadd.f32 %v3468_v39, %v3343_v51  ;;  %v3607_v31 = vadd.f32 %v4483_v55, %v3476_v30 }
 0x3c5   : > { %v4466_v28 = vpop.f32.mrf.mxu0  ;;  %v4520_v26 = vpop.f32.mrf.mxu1 }
 0x3c6   : > { %v3490_v19 = vadd.f32 %v4466_v28, %v3361_v46  ;;  %v3599_v49 = vadd.f32 %v3598_v34, %v3469_v10 }
 0x3c7   : > { %v3482_v62 = vpop.f32.mrf.mxu0  ;;  %v3834_v8 = vpop.f32.mrf.mxu1 }
 0x3c8   : > { %v3483_v57 = vadd.f32 %v3482_v62, %v3355_v42  ;;  %v3623_v16 = vadd.f32 %v6139_v32, %v3490_v19 }
 0x3c9   : > { %v4497_v44 = vpop.f32.mrf.mxu0  ;;  %v4523_v20 = vpop.f32.mrf.mxu1 }
 0x3ca   : > { %v3712_v0 = vadd.f32 %v4497_v44, %v3575_v29  ;;  %v3615_v61 = vadd.f32 %v6141_v18, %v3483_v57 }
 0x3cb   : > { %v3705_v54 = vpop.f32.mrf.mxu0  ;;  %v3846_v40 = vpop.f32.mrf.mxu1 }
 0x3cc   : > { %v3829_v21 = vadd.f32 %v4517_v14, %v3712_v0  ;;  %v3706_v56 = vadd.f32 %v3705_v54, %v3567_v13 }
 0x3cd   : > { %v4500_v6 = vpop.f32.mrf.mxu0  ;;  %v4526_v36 = vpop.f32.mrf.mxu1 }
 0x3ce   : > { %3869 = vst.msk [vmem:[%s6148_s17 + $0x8] sm:$0xff] %vm460_vm0, %v3829_v21  ;;  %v3823_v25 = vadd.f32 %v3822_v45, %v3706_v56  ;;  %v3724_v7 = vadd.f32 %v4500_v6, %v3591_v4 }
 0x3cf   : > { %v3717_v58 = vpop.f32.mrf.mxu0  ;;  %v3858_v11 = vpop.f32.mrf.mxu1 }
 0x3d0   : > { %3868 = vst.msk [vmem:[%s6148_s17] sm:$0xff] %vm460_vm0, %v3823_v25  ;;  %v3841_v12 = vadd.f32 %v4520_v26, %v3724_v7  ;;  %v3718_v9 = vadd.f32 %v3717_v58, %v3583_v47 }
 0x3d1   : > { %v4503_v17 = vpop.f32.mrf.mxu0 }
 0x3d2   : > { %3871 = vst.msk [vmem:[%s6148_s17 + $0x18] sm:$0xff] %vm460_vm0, %v3841_v12  ;;  %v3835_v5 = vadd.f32 %v3834_v8, %v3718_v9  ;;  %v3736_v63 = vadd.f32 %v4503_v17, %v3607_v31 }
 0x3d3   : > { %v3729_v48 = vpop.f32.mrf.mxu0 }
 0x3d4   : > { %3870 = vst.msk [vmem:[%s6148_s17 + $0x10] sm:$0xff] %vm460_vm0, %v3835_v5  ;;  %v3853_v38 = vadd.f32 %v4523_v20, %v3736_v63  ;;  %v3730_v24 = vadd.f32 %v3729_v48, %v3599_v49 }
 0x3d5   : > { %v4506_v55 = vpop.f32.mrf.mxu0 }
 0x3d6   : > { %3873 = vst.msk [vmem:[%s6148_s17 + $0x28] sm:$0xff] %vm460_vm0, %v3853_v38  ;;  %v3847_v2 = vadd.f32 %v3846_v40, %v3730_v24  ;;  %v3748_v41 = vadd.f32 %v4506_v55, %v3623_v16 }
 0x3d7   : > { %v3741_v43 = vpop.f32.mrf.mxu0 }
 0x3d8   : > { %3872 = vst.msk [vmem:[%s6148_s17 + $0x20] sm:$0xff] %vm460_vm0, %v3847_v2  ;;  %v3865_v34 = vadd.f32 %v4526_v36, %v3748_v41  ;;  %v3742_v14 = vadd.f32 %v3741_v43, %v3615_v61 }
 0x3da   : > { %3875 = vst.msk [vmem:[%s6148_s17 + $0x38] sm:$0xff] %vm460_vm0, %v3865_v34  ;;  %v3859_v22 = vadd.f32 %v3858_v11, %v3742_v14 }
 0x3dc   : > { %3874 = vst.msk [vmem:[%s6148_s17 + $0x30] sm:$0xff] %vm460_vm0, %v3859_v22 }
 0x3dd PF: > { %s23_s25 = sadd.s32 1, %s4625_s25  }
 0x3de   : > { %p20_p4 = scmp.ge.s32.totalorder %s23_s25, 4  }
 0x3e0   :  { %22 = sbr.rel (!%p20_p4) target bundleno = 1 (0x1), region = 102 }

</bundles_post_ra>
